<compile_context>
chip_gen: v7x
topology: tpu7x:2x2x1
jax: 0.10.0
libtpu: 0.0.40
codegen_flags: <defaults>
</compile_context>

<pallas_src>
import functools
import math

import jax
import jax.numpy as jnp
from jax.experimental import pallas as pl
from jax.experimental.pallas import tpu as pltpu


def _feature_attn_kernel(x_ref, w12_ref, blin_ref, a_ref, bias_ref, o_ref, *,
                         alpha):
    BB, K, W = x_ref.shape
    E = blin_ref.shape[1]

    x = x_ref[...]                                   # (BB, K, W) f32

    # Single fused MXU matmul over the whole batch block:
    #   lin(concat(x_i, x_j)) == x_i @ W1^T + x_j @ W2^T + b_lin
    xf = x.reshape(BB * K, W)                        # leading-dim collapse (layout preserving)
    wx12 = jnp.dot(xf, w12_ref[...],
                   preferred_element_type=jnp.float32)            # (BB*K, 2E)
    wx1 = wx12[:, :E].reshape(BB, K, E)              # term acting on x_i
    wx2 = wx12[:, E:].reshape(BB, K, E)              # term acting on x_j

    blin = blin_ref[...]                             # (1, E)
    # z[b, i, j, :] = Wx1[b, i] + Wx2[b, j] + b_lin  -> (BB, K, K, E)
    z = wx1[:, :, None, :] + wx2[:, None, :, :] + blin[None, None, :, :]
    z = jnp.where(z > 0, z, alpha * z)               # LeakyReLU(alpha)

    # e[b, i, j] = z[b, i, j, :] . a   (VPU multiply + lane reduce)
    a_row = a_ref[...]                               # (1, E)
    e = jnp.sum(z * a_row[None, None, :, :], axis=-1)             # (BB, K, K)
    e = e + bias_ref[...][None, :, :]

    # softmax over j; approx reciprocal uses the otherwise-idle EUP slot.
    m = jnp.max(e, axis=-1, keepdims=True)
    p = jnp.exp(e - m)
    attn = p * pl.reciprocal(jnp.sum(p, axis=-1, keepdims=True), approx=True)

    # TODO(synk): dropout omitted (p = 0.0 -> identity in this configuration).
    h = jnp.einsum('bij,bjw->biw', attn, x,
                   preferred_element_type=jnp.float32)            # (BB, K, W)
    o_ref[...] = jax.nn.sigmoid(h).astype(o_ref.dtype)


def feature_attention_layer(x, lin_w, lin_b, a_vec, bias, *, alpha,
                            block_b=None):
    """x: (B, window_size, n_features) float32. Returns (B, window_size, n_features)."""
    B, Wn, K = x.shape
    E = lin_w.shape[0]                               # embed_dim (= 2 * window_size here)
    assert lin_w.shape == (E, 2 * Wn)

    xp = jnp.transpose(x, (0, 2, 1)).astype(jnp.float32)          # (B, K, W)

    # Batch block size: amortize per-step overhead, keep >=2 grid programs so
    # both v7x TensorCores get work, cap the VMEM working set (~1-2 MiB @ 128).
    if block_b is None:
        block_b = min(128, max(1, B // 2)) if B >= 2 else 1
    num_blocks = pl.cdiv(B, block_b)
    Bp = num_blocks * block_b
    if Bp != B:                                      # zero-pad ragged tail batch block
        xp = jnp.concatenate(
            [xp, jnp.zeros((Bp - B, K, Wn), xp.dtype)], axis=0)

    # Fused weight [W1^T | W2^T]: exact split of nn.Linear(2W -> E) over concat.
    w12t = jnp.concatenate(
        [jnp.transpose(lin_w[:, :Wn]), jnp.transpose(lin_w[:, Wn:])],
        axis=1).astype(jnp.float32)                                # (W, 2E)
    blin = lin_b.reshape(1, E).astype(jnp.float32)                 # (1, E)
    a_row = a_vec.reshape(1, E).astype(jnp.float32)                # (1, E)
    bias = bias.astype(jnp.float32)                                # (K, K)

    kernel = functools.partial(_feature_attn_kernel, alpha=alpha)

    out = pl.pallas_call(
        kernel,
        out_shape=jax.ShapeDtypeStruct((Bp, K, Wn), jnp.float32),
        grid_spec=pltpu.PrefetchScalarGridSpec(
            num_scalar_prefetch=0,
            grid=(num_blocks,),
            in_specs=[
                pl.BlockSpec((block_b, K, Wn), lambda b: (b, 0, 0)),  # x batch block
                pl.BlockSpec((Wn, 2 * E), lambda b: (0, 0)),          # fused [W1^T|W2^T]
                pl.BlockSpec((1, E), lambda b: (0, 0)),               # lin bias
                pl.BlockSpec((1, E), lambda b: (0, 0)),               # attention vector a
                pl.BlockSpec((K, K), lambda b: (0, 0)),               # bias matrix
            ],
            out_specs=pl.BlockSpec((block_b, K, Wn), lambda b: (b, 0, 0)),
        ),
        compiler_params=pltpu.CompilerParams(
            dimension_semantics=("parallel",)),
    )(xp, w12t, blin, a_row, bias)

    out = out[:B]                                    # drop zero-padded batches
    return jnp.transpose(out, (0, 2, 1))             # back to (B, window, n_features)


def reference_forward(x, lin_w, lin_b, a_vec, bias, *, alpha):
    """Pure-JAX mirror of the PyTorch forward (gatv2=True, use_bias=True)."""
    xp = jnp.transpose(x, (0, 2, 1))                 # (B, K, W)
    B, K, Wn = xp.shape
    rep = jnp.repeat(xp, K, axis=1)                  # repeat_interleave along dim=1
    alt = jnp.tile(xp, (1, K, 1))                    # repeat along dim=1
    comb = jnp.concatenate([rep, alt], axis=2).reshape(B, K, K, 2 * Wn)
    lin = comb @ lin_w.T + lin_b
    lin = jnp.where(lin > 0, lin, alpha * lin)
    e = (lin @ a_vec.reshape(-1, 1))[..., 0]         # (B, K, K)
    e = e + bias
    attn = jax.nn.softmax(e, axis=2)
    h = jax.nn.sigmoid(attn @ xp)                    # (B, K, W)
    return jnp.transpose(h, (0, 2, 1))


if __name__ == "__main__":
    # Module hyper-parameters (small, consistent with the forward pass).
    batch = 9             # exercises batch blocking (block_b=4, grid=3) + tail padding
    n_features = 8        # K (graph nodes)
    window_size = 16      # W (sequence length)
    embed_dim = 2 * window_size   # gatv2 doubles embed_dim (default None -> window)
    alpha = 0.2
    dropout = 0.0

    key = jax.random.PRNGKey(0)
    k_x, k_w, k_b, k_a, k_bias = jax.random.split(key, 5)

    # Deterministic parameter init (shapes from __init__).
    lin_in = 2 * window_size
    bound = 1.0 / math.sqrt(lin_in)
    lin_w = jax.random.uniform(k_w, (embed_dim, lin_in), jnp.float32, -bound, bound)
    lin_b = jax.random.uniform(k_b, (embed_dim,), jnp.float32, -bound, bound)
    xav = 1.414 * math.sqrt(6.0 / (embed_dim + 1))
    a_vec = jax.random.uniform(k_a, (embed_dim, 1), jnp.float32, -xav, xav)
    bias = 0.01 * jax.random.normal(k_bias, (n_features, n_features), jnp.float32)

    x = jax.random.normal(k_x, (batch, window_size, n_features), jnp.float32)

    out = feature_attention_layer(x, lin_w, lin_b, a_vec, bias, alpha=alpha)
    out = jax.block_until_ready(out)

    ref = reference_forward(x, lin_w, lin_b, a_vec, bias, alpha=alpha)
    assert out.shape == (batch, window_size, n_features)
    # Tolerance loosened vs. 1e-5 because of the approx (EUP) softmax reciprocal.
    assert jnp.allclose(out, ref, atol=5e-3, rtol=5e-3), "mismatch vs reference"

    print("KERNEL_OK")
</pallas_src>

<mosaic_0001>
module attributes {stable_mosaic.version = 11 : i64} {
  func.func @_feature_attn_kernel(%arg0: i32, %arg1: memref<4x8x16xf32, #tpu.memory_space<vmem>>, %arg2: memref<16x64xf32, #tpu.memory_space<vmem>>, %arg3: memref<1x32xf32, #tpu.memory_space<vmem>>, %arg4: memref<1x32xf32, #tpu.memory_space<vmem>>, %arg5: memref<8x8xf32, #tpu.memory_space<vmem>>, %arg6: memref<4x8x16xf32, #tpu.memory_space<vmem>>) attributes {dimension_semantics = [#tpu.dimension_semantics<parallel>], iteration_bounds = array<i64: 3>, scalar_prefetch = 0 : i64, scratch_operands = 0 : i64, tpu.core_type = #tpu.core_type<tc>, window_params = [{transform_indices = @transform_0, window_bounds = array<i64: 4, 8, 16>}, {pipeline_mode = #tpu.pipeline_mode<synchronous>, transform_indices = @transform_1, window_bounds = array<i64: 16, 64>}, {pipeline_mode = #tpu.pipeline_mode<synchronous>, transform_indices = @transform_2, window_bounds = array<i64: 1, 32>}, {pipeline_mode = #tpu.pipeline_mode<synchronous>, transform_indices = @transform_3, window_bounds = array<i64: 1, 32>}, {pipeline_mode = #tpu.pipeline_mode<synchronous>, transform_indices = @transform_4, window_bounds = array<i64: 8, 8>}, {transform_indices = @transform_5, window_bounds = array<i64: 4, 8, 16>}]} {
    %c0 = arith.constant 0 : index
    %c0_0 = arith.constant 0 : index
    %c0_1 = arith.constant 0 : index
    %0 = vector.load %arg1[%c0, %c0_0, %c0_1] : memref<4x8x16xf32, #tpu.memory_space<vmem>>, vector<4x8x16xf32>
    %1 = vector.shape_cast %0 : vector<4x8x16xf32> to vector<32x16xf32>
    %c0_2 = arith.constant 0 : index
    %c0_3 = arith.constant 0 : index
    %2 = vector.load %arg2[%c0_2, %c0_3] : memref<16x64xf32, #tpu.memory_space<vmem>>, vector<16x64xf32>
    %cst = arith.constant dense<0.000000e+00> : vector<32x64xf32>
    %3 = tpu.matmul %1, %2, %cst {dimension_numbers = #tpu.dot_dimension_numbers<[1], [0], [0], [1], [0, 0, 1, 1], [], []>} : vector<32x16xf32>, vector<16x64xf32>, vector<32x64xf32> -> vector<32x64xf32>
    %4 = vector.extract_strided_slice %3 {offsets = [0, 0], sizes = [32, 32], strides = [1, 1]} : vector<32x64xf32> to vector<32x32xf32>
    %5 = vector.shape_cast %4 : vector<32x32xf32> to vector<4x8x32xf32>
    %6 = vector.extract_strided_slice %3 {offsets = [0, 32], sizes = [32, 32], strides = [1, 1]} : vector<32x64xf32> to vector<32x32xf32>
    %7 = vector.shape_cast %6 : vector<32x32xf32> to vector<4x8x32xf32>
    %c0_4 = arith.constant 0 : index
    %c0_5 = arith.constant 0 : index
    %8 = vector.load %arg3[%c0_4, %c0_5] : memref<1x32xf32, #tpu.memory_space<vmem>>, vector<1x32xf32>
    %9 = vector.shape_cast %5 : vector<4x8x32xf32> to vector<4x8x1x32xf32>
    %10 = vector.shape_cast %7 : vector<4x8x32xf32> to vector<4x1x8x32xf32>
    %11 = vector.broadcast %9 : vector<4x8x1x32xf32> to vector<4x8x8x32xf32>
    %12 = vector.broadcast %10 : vector<4x1x8x32xf32> to vector<4x8x8x32xf32>
    %13 = arith.addf %11, %12 : vector<4x8x8x32xf32>
    %14 = vector.shape_cast %8 : vector<1x32xf32> to vector<1x1x1x32xf32>
    %15 = vector.broadcast %14 : vector<1x1x1x32xf32> to vector<4x8x8x32xf32>
    %16 = arith.addf %13, %15 : vector<4x8x8x32xf32>
    %cst_6 = arith.constant 0.000000e+00 : f32
    %17 = vector.broadcast %cst_6 : f32 to vector<4x8x8x32xf32>
    %18 = arith.cmpf ogt, %16, %17 : vector<4x8x8x32xf32>
    %cst_7 = arith.constant 2.000000e-01 : f32
    %19 = vector.broadcast %cst_7 : f32 to vector<4x8x8x32xf32>
    %20 = arith.mulf %19, %16 : vector<4x8x8x32xf32>
    %21 = arith.select %18, %16, %20 : vector<4x8x8x32xi1>, vector<4x8x8x32xf32>
    %c0_8 = arith.constant 0 : index
    %c0_9 = arith.constant 0 : index
    %22 = vector.load %arg4[%c0_8, %c0_9] : memref<1x32xf32, #tpu.memory_space<vmem>>, vector<1x32xf32>
    %23 = vector.shape_cast %22 : vector<1x32xf32> to vector<1x1x1x32xf32>
    %24 = vector.broadcast %23 : vector<1x1x1x32xf32> to vector<4x8x8x32xf32>
    %25 = arith.mulf %21, %24 : vector<4x8x8x32xf32>
    %cst_10 = arith.constant dense<0.000000e+00> : vector<4x8x8xf32>
    %26 = vector.multi_reduction <add>, %25, %cst_10 [3] : vector<4x8x8x32xf32> to vector<4x8x8xf32>
    %c0_11 = arith.constant 0 : index
    %c0_12 = arith.constant 0 : index
    %27 = vector.load %arg5[%c0_11, %c0_12] : memref<8x8xf32, #tpu.memory_space<vmem>>, vector<8x8xf32>
    %28 = vector.shape_cast %27 : vector<8x8xf32> to vector<1x8x8xf32>
    %29 = vector.broadcast %28 : vector<1x8x8xf32> to vector<4x8x8xf32>
    %30 = arith.addf %26, %29 : vector<4x8x8xf32>
    %cst_13 = arith.constant dense<0xFF800000> : vector<4x8xf32>
    %31 = vector.multi_reduction <maximumf>, %30, %cst_13 [2] : vector<4x8x8xf32> to vector<4x8xf32>
    %32 = vector.shape_cast %31 : vector<4x8xf32> to vector<4x8x1xf32>
    %33 = vector.broadcast %32 : vector<4x8x1xf32> to vector<4x8x8xf32>
    %34 = arith.subf %30, %33 : vector<4x8x8xf32>
    %35 = math.exp %34 : vector<4x8x8xf32>
    %cst_14 = arith.constant dense<0.000000e+00> : vector<4x8xf32>
    %36 = vector.multi_reduction <add>, %35, %cst_14 [2] : vector<4x8x8xf32> to vector<4x8xf32>
    %37 = vector.shape_cast %36 : vector<4x8xf32> to vector<4x8x1xf32>
    %38 = tpu.reciprocal %37 {approx = true} : vector<4x8x1xf32> -> vector<4x8x1xf32>
    %39 = vector.broadcast %38 : vector<4x8x1xf32> to vector<4x8x8xf32>
    %40 = arith.mulf %35, %39 : vector<4x8x8xf32>
    "tpu.trace_start"() <{level = 10 : i32, message = "bij,bjw->biw"}> : () -> ()
    %cst_15 = arith.constant dense<0.000000e+00> : vector<4x8x16xf32>
    %41 = tpu.matmul %40, %0, %cst_15 {dimension_numbers = #tpu.dot_dimension_numbers<[2], [1], [1], [2], [0, 0, 0, 1, 1, 2], [0], [0]>} : vector<4x8x8xf32>, vector<4x8x16xf32>, vector<4x8x16xf32> -> vector<4x8x16xf32>
    "tpu.trace_stop"() : () -> ()
    %42 = arith.negf %41 : vector<4x8x16xf32>
    %43 = math.exp %42 : vector<4x8x16xf32>
    %cst_16 = arith.constant 1.000000e+00 : f32
    %44 = vector.broadcast %cst_16 : f32 to vector<4x8x16xf32>
    %45 = arith.addf %44, %43 : vector<4x8x16xf32>
    %46 = arith.divf %44, %45 : vector<4x8x16xf32>
    %c0_17 = arith.constant 0 : index
    %c0_18 = arith.constant 0 : index
    %c0_19 = arith.constant 0 : index
    %47 = vector.load %arg6[%c0_17, %c0_18, %c0_19] : memref<4x8x16xf32, #tpu.memory_space<vmem>>, vector<4x8x16xf32>
    tpu.vector_store %arg6[%c0_17, %c0_18, %c0_19], %46 {strides = array<i32>} : memref<4x8x16xf32, #tpu.memory_space<vmem>>, vector<4x8x16xf32>,
    return
  }
  func.func @transform_0(%arg0: i32) -> (i32, i32, i32) {
    %c0_i32 = arith.constant 0 : i32
    %c0_i32_0 = arith.constant 0 : i32
    %c0_i32_1 = arith.constant 0 : i32
    return %arg0, %c0_i32, %c0_i32_0 : i32, i32, i32
  }
  func.func @transform_1(%arg0: i32) -> (i32, i32) {
    %c0_i32 = arith.constant 0 : i32
    %c0_i32_0 = arith.constant 0 : i32
    %c0_i32_1 = arith.constant 0 : i32
    return %c0_i32, %c0_i32_0 : i32, i32
  }
  func.func @transform_2(%arg0: i32) -> (i32, i32) {
    %c0_i32 = arith.constant 0 : i32
    %c0_i32_0 = arith.constant 0 : i32
    %c0_i32_1 = arith.constant 0 : i32
    return %c0_i32, %c0_i32_0 : i32, i32
  }
  func.func @transform_3(%arg0: i32) -> (i32, i32) {
    %c0_i32 = arith.constant 0 : i32
    %c0_i32_0 = arith.constant 0 : i32
    %c0_i32_1 = arith.constant 0 : i32
    return %c0_i32, %c0_i32_0 : i32, i32
  }
  func.func @transform_4(%arg0: i32) -> (i32, i32) {
    %c0_i32 = arith.constant 0 : i32
    %c0_i32_0 = arith.constant 0 : i32
    %c0_i32_1 = arith.constant 0 : i32
    return %c0_i32, %c0_i32_0 : i32, i32
  }
  func.func @transform_5(%arg0: i32) -> (i32, i32, i32) {
    %c0_i32 = arith.constant 0 : i32
    %c0_i32_0 = arith.constant 0 : i32
    %c0_i32_1 = arith.constant 0 : i32
    return %arg0, %c0_i32, %c0_i32_0 : i32, i32, i32
  }
}

</mosaic_0001>

<bundles_post_ra>
// kernel: tpu_custom_call.1
= control target key start
LH: loop header
LB: loop body
LE: loop exit
PB: predicated region body
PF: predicated region fallthrough
CT: control target
= control target key end

     0   :  { %10 = vsyncpa [#allocation3], 0  ;;  %s4497_s0 = inlined_call_operand.hbm [shape: f32[12,8,16], index: 0, kind: input, shape index: {}]   ;;  %s4498_s1 = inlined_call_operand.hbm [shape: f32[16,64], index: 1, kind: input, shape index: {}]   ;;  %s4499_s2 = inlined_call_operand.vmem [shape: f32[1,32], index: 2, kind: input, shape index: {}]   ;;  %s4500_s3 = inlined_call_operand.vmem [shape: f32[1,32], index: 3, kind: input, shape index: {}]   ;;  %s4501_s4 = inlined_call_operand.vmem [shape: f32[8,8], index: 4, kind: input, shape index: {}]   ;;  %s4502_s5 = inlined_call_operand.hbm [shape: f32[12,8,16], index: 5, kind: output, shape index: {}]  }
   0x1   :  { %12 = vsyncpa [#allocation3 + $0x1], 0 }
   0x2   :  { %13 = vsyncpa [#allocation6], 0 }
   0x3   :  { %14 = vsyncpa [#allocation4], 0 }
   0x4   :  { %16 = vsyncpa [#allocation4 + $0x1], 0  ;;  %s3316_s18 = smov 0   ;;  %s3318_s19 = smov 0  }
   0x5   :  { %s3320_s20 = smov 0   ;;  %s3322_s21 = smov 0  }
   0x6 LB: > { %s3337_s22 = sadd.s32 4294967295, %s3272_s21   ;;  %s2904_s23 = sadd.s32 4294967294, %s3272_s21   ;;  %s3272_s21 = sphi %s3322_s21, %s4530_s21   ;;  %s3268_s20 = sphi %s3320_s20, %s4529_s20   ;;  %s3264_s19 = sphi %s3318_s19, %s4528_s19   ;;  %s3260_s18 = sphi %s3316_s18, %s4527_s18  }
   0x7   : > { %p42_p0 = scmp.ne.s32.totalorder %s3264_s19, %s3260_s18  ;;  %p4503_p1 = scmp.eq.s32.totalorder %s3337_s22, 0 }
   0x8   : > { %p156_p3 = scmp.eq.s32.totalorder %s2904_s23, 2  ;;  %p2905_p5 = scmp.ge.s32.totalorder %s3272_s21, 1 }
   0x9   : > { %p3346_p4 = por %p4503_p1, %p42_p0  ;;  %p163_p7 = scmp.lt.s32.totalorder %s3272_s21, 4 }
   0xa   : > { %p3351_p6 = por %p156_p3, %p42_p0  ;;  %s3274_s27 = smov [#allocation5]  }
   0xb   : > { %s4507_s24 = scalar_select %p3346_p4, 1, 0 }
   0xc   : > { %s4508_s25 = scalar_select %p3351_p6, 1, 0 }
   0xd   : > { %p3356_p8 = pnand %p2905_p5, %p163_p7  ;;  %s175_s28 = sshll.u32 %s3274_s27, 4  ;;  %s176_s28 = int_to_ptr.vmem [resolvable:$true] %s175_s28 }
   0xe   : > { %s3369_s30 = sadd.s32 1, %s3272_s21   ;;  %s29_s6 = sadd.s32 1, %s3268_s20 }
   0xf   : > { %s4509_s26 = scalar_select %p3356_p8, 1, 0 }
  0x10   : > { %p2992_p9 = pneg %p3356_p8  ;;  %s26_s7 = ssub.s32 %s3272_s21, %s3369_s30 }
  0x11   : > { %s3144_s10 = scalar_lea.hbm %s4498_s1, 256 }
  0x12   : > { %p3364_p10 = pnand %p2992_p9, %p4503_p1  ;;  %p3145_p11 = scmp.ne.s32.totalorder %s4498_s1, %s3144_s10 }
  0x13   : > { %p3151_p3 = scmp.lt.u32.totalorder %s3144_s10, %s4498_s1 }
  0x14   : > { %p3146_p12 = pneg %p3364_p10 }
  0x16   : > { %p3147_p13 = pnand %p3146_p12, %p3145_p11 }
  0x18   : > { %p3148_p0 = pneg %p3147_p13 }
  0x1a   : > { %p3153_p5 = pnand %p3151_p3, %p3148_p0 }
  0x1c   : > { %3156 = shalt.err (!%p3153_p5)
}
  0x1d   : > { %s3157_s15 = scalar_lea.vmem %s176_s28, 256  ;;  %p3165_p2 = scmp.lt.s32.totalorder %s176_s28, %s176_s28 }
  0x1e   : > { %p3158_p7 = scmp.ne.s32.totalorder %s176_s28, %s3157_s15  ;;  %p3166_p6 = scmp.lt.s32.totalorder %s3157_s15, %s3157_s15 }
  0x20   : > { %p3160_p9 = pnand %p3158_p7, %p3146_p12  ;;  %p3167_p4 = por %p3166_p6, %p3165_p2 }
  0x22   : > { %p3161_p1 = pneg %p3160_p9 }
  0x24   : > { %p3168_p8 = pnand %p3167_p4, %p3161_p1 }
  0x26   : > { %3171 = shalt.err (!%p3168_p8)
}
  0x27   : > { %s3275_s16 = smov 128   ;;  %s3276_s17 = smov 8  }
  0x28   : > { %2995 = dma.hbm_to_vmem [thread:$0]  (!%p3364_p10), %s4498_s1, 256, %s176_s28, [#allocation6], %s3275_s16, %s3275_s16, %s3276_s17  }
  0x29   : > { %p27_p1 = scmp.eq.s32.totalorder %s26_s7, 0  ;;  %p36_p2 = scmp.ne.s32.totalorder %s3268_s20, %s3264_s19 }
  0x2a   : > { %p37_p4 = scmp.eq.s32.totalorder %s3272_s21, 0  ;;  %p3005_p6 = scmp.lt.s32.totalorder %s3272_s21, 3 }
  0x2b   : > { %s3398_s8 = scalar_select %p27_p1, %s3268_s20, %s29_s6  }
  0x2c   : > { %p38_p8 = por %p37_p4, %p36_p2  ;;  %p4511_p11 = scmp.eq.s32.totalorder %s3337_s22, 2 }
  0x2d   : > { %s198_s29 = sand.u32 1, %s3268_s20   ;;  %s2934_s10 = sshll.u32 %s3272_s21, 9 }
  0x2e   : > { %p3402_p12 = por %p4511_p11, %p36_p2  ;;  %s2908_s11 = sshll.u32 %s198_s29, 5 }
  0x2f   : > { %s3411_s14 = scalar_lea.hbm %s4497_s0, %s2934_s10  ;;  %s202_s28 = scalar_lea.vmem [#allocation2], %s2908_s11 }
  0x30   : > { %s209_s6 = sshll.u32 %s202_s28, 4  ;;  %p3413_p10 = pnand %p3005_p6, %p38_p8  ;;  %s3417_s6 = int_to_ptr.vmem [resolvable:$true] %s209_s6 }
  0x31   : > { %s3419_s15 = scalar_lea.sflag [#allocation3], %s198_s29  ;;  %s3172_s23 = scalar_lea.hbm %s3411_s14, 512 }
  0x32   : > { %p3173_p13 = scmp.ne.s32.totalorder %s3411_s14, %s3172_s23  ;;  %p3174_p0 = pneg %p3413_p10 }
  0x33   : > { %s3177_s11 = scalar_lea.hbm %s4497_s0, 1536  ;;  %p3178_p7 = scmp.lt.u32.totalorder %s3411_s14, %s4497_s0 }
  0x34   : > { %p3175_p3 = pnand %p3174_p0, %p3173_p13  ;;  %p3179_p9 = scmp.lt.u32.totalorder %s3177_s11, %s3172_s23 }
  0x35   : > { %p3181_p2 = scmp.lt.u32.totalorder %s3172_s23, %s3411_s14 }
  0x36   : > { %p3176_p5 = pneg %p3175_p3  ;;  %p3180_p1 = por %p3179_p9, %p3178_p7 }
  0x38   : > { %p3182_p4 = por %p3181_p2, %p3180_p1 }
  0x3a   : > { %p3183_p6 = pnand %p3182_p4, %p3176_p5 }
  0x3c   : > { %3186 = shalt.err (!%p3183_p6)
}
  0x3d   : > { %s3187_s29 = scalar_lea.vmem %s3417_s6, 512  ;;  %s3277_s28 = smov [#allocation2]  }
  0x3e   : > { %p3188_p8 = scmp.ne.s32.totalorder %s3417_s6, %s3187_s29  ;;  %s3192_s27 = sshll.u32 %s3277_s28, 4  ;;  %s3193_s27 = int_to_ptr.vmem [resolvable:$false] %s3192_s27 }
  0x3f   : > { %s3194_s10 = scalar_lea.vmem %s3193_s27, 1024  ;;  %p3195_p3 = scmp.lt.s32.totalorder %s3417_s6, %s3193_s27 }
  0x40   : > { %p3190_p11 = pnand %p3188_p8, %p3174_p0  ;;  %p3196_p7 = scmp.lt.s32.totalorder %s3194_s10, %s3187_s29 }
  0x42   : > { %p3191_p13 = pneg %p3190_p11  ;;  %p3197_p9 = por %p3196_p7, %p3195_p3 }
  0x44   : > { %p3198_p1 = pnand %p3197_p9, %p3191_p13 }
  0x46   : > { %3201 = shalt.err (!%p3198_p1)
}
  0x47   : > { %2999 = dma.hbm_to_vmem [thread:$0]  (!%p3413_p10), %s3411_s14, 512, %s3417_s6, %s3419_s15, %s3275_s16, %s3275_s16, %s3276_s17  }
  0x48   : > { %p4514_p0 = scmp.ne.s32.totalorder %s4509_s26, 0 }
  0x49   : > { %s3453_s23 = sand.u32 (!%p4514_p0), 1, %s3264_s19   ;;  %p4515_p5 = scmp.ne.s32.totalorder (!%p4514_p0), %s4507_s24, 0 }
  0x4a   : > { %221 = sbr.rel (%p4514_p0) target bundleno = 1667 (0x683), region = 40  ;;  %s2912_s11 = sshll.u32 (!%p4514_p0), %s3453_s23, 5 }
  0x4b   : > { %s224_s12 = scalar_lea.sflag (!%p4514_p0), [#allocation3], %s3453_s23  ;;  %s3459_s7 = scalar_lea.vmem (!%p4514_p0), [#allocation2], %s2912_s11 }
  0x51   : > { %3247 = dma.done.wait (%p4515_p5), %s224_s12, 512  }
  0x52   : > { %3249 = vsyncadd (%p4515_p5), %s224_s12, 4294966784  ;;  %p4516_p10 = scmp.eq.s32.totalorder %s3337_s22, 0 }
  0x54   : > { %3251 = dma.done.wait (%p4516_p10), [#allocation6], 256   ;;  %p4517_p2 = pmov %p4516_p10 }
  0x55   : > { %v4506_v0 = vlaneseq  ;;  %vm266_vm0 = vcmask 130048   ;;  %v264_v4 = vld [vmem:[#allocation5] sm:$0xff]  ;;  %v265_v5 = vld [vmem:[#allocation5 + $0x8] sm:$0xff]  ;;  %v262_v14 = vld [vmem:[%s3459_s7 + $0x10] sm:$0xff]  ;;  %s3278_s16 = smov 96   ;;  %vm942_vm1 = vcmask 261120  }
  0x56   : > { %3253 = vsyncadd (%p4517_p2), [#allocation6], 4294967040  ;;  %v260_v6 = vld [vmem:[%s3459_s7] sm:$0xff]  ;;  %v2980_v7 = vpack.c.bf16 %v265_v5, %v264_v4  ;;  %v261_v13 = vld [vmem:[%s3459_s7 + $0x8] sm:$0xff]  ;;  %v3279_v30 = vmov 1966171168  }
  0x57   : > { %v3470_v1 = vshrl.u32 %v4506_v0, 7  ;;  %2954 = vmatprep.mubr.msk.f32.mxu0 %vm266_vm0, %v260_v6  ;;  %v1039_v10 = vld [vmem:[%s4501_s4] sm:$0xff]  ;;  %v263_v19 = vld [vmem:[%s3459_s7 + $0x18] sm:$0xff]  ;;  %v371_v31 = vunpack.c.l.s4 %v3279_v30  ;;  %s257_s13 = scalar_lea.vmem [#allocation7], %s2912_s11  ;;  %s2935_s29 = sshll.u32 %s3337_s22, 9 }
  0x58   : > { %2981 = vmatprep.subr.bf16.mxu0 %v2980_v7  ;;  %s2821_s28 = sshll.u32 %s257_s13, 4  ;;  %s4450_s11 = scalar_lea.hbm %s4502_s5, %s2935_s29  ;;  %s4452_s28 = int_to_ptr.vmem [resolvable:$true] %s2821_s28 }
  0x59   : > { %v3473_v2 = vsub.s32 0, %v3470_v1  ;;  %v3476_v3 = vsub.s32 1, %v3470_v1  ;;  %v3481_v8 = vsub.s32 2, %v3470_v1  ;;  %v3484_v9 = vsub.s32 4, %v3470_v1  ;;  %2983 = vmatpush3.bf16.msra.mxu0 %v2980_v7  ;;  %s2808_s12 = scalar_lea.sflag [#allocation4], %s3453_s23  ;;  %s3283_s22 = smov [#allocation7]  }
  0x5a   : > { %v3496_v17 = vsub.s32 3, %v3470_v1  ;;  %v3499_v18 = vsub.s32 6, %v3470_v1  ;;  %v3507_v22 = vsub.s32 5, %v3470_v1  ;;  %v3512_v24 = vsub.s32 7, %v3470_v1  ;;  %s3206_s24 = sshll.u32 %s3283_s22, 4  ;;  %s3207_s24 = int_to_ptr.vmem [resolvable:$false] %s3206_s24 }
  0x5b   : > { %v1044_v11 = vrot.slane %v1039_v10, %v3473_v2  ;;  %v1051_v12 = vrot.slane %v1039_v10, %v3476_v3  ;;  %v1058_v15 = vrot.slane %v1039_v10, %v3481_v8  ;;  %v1072_v16 = vrot.slane %v1039_v10, %v3484_v9  ;;  %s3208_s26 = scalar_lea.vmem %s3207_s24, 1024  ;;  %p3209_p11 = scmp.lt.s32.totalorder %s4452_s28, %s3207_s24 }
  0x5c   : > { %2955 = vmatmul.mubr.msk.f32.vlgmr.msra.gmra.mrb[0].mxu0 %vm266_vm0, %v261_v13  ;;  %v1065_v20 = vrot.slane %v1039_v10, %v3496_v17  ;;  %v1086_v21 = vrot.slane %v1039_v10, %v3499_v18  ;;  %v1079_v23 = vrot.slane %v1039_v10, %v3507_v22  ;;  %v1093_v25 = vrot.slane %v1039_v10, %v3512_v24 }
  0x5d   : > { %1046 = vbcast.lane.b32.xlu1 %v1044_v11, 256  ;;  %1053 = vbcast.lane.b32.xlu0 %v1051_v12, 256  ;;  %v372_v32 = vunpack.c.0.s8 %v371_v31 }
  0x5e   : > { %2957 = vmatprep.mubr.msk.f32.mxu0 %vm266_vm0, %v262_v14 }
  0x5f   : > { %v3516_v33 = vsub.s32 %v372_v32, %v3470_v1 }
  0x60   : > { %2958 = vmatmul.mubr.msk.f32.gmra.mrb[2].mxu0 %vm266_vm0, %v263_v19 }
  0x61   : > { %1060 = vbcast.lane.b32.xlu1 %v1058_v15, 256  ;;  %1074 = vbcast.lane.b32.xlu0 %v1072_v16, 256 }
  0x65   : > { %1067 = vbcast.lane.b32.xlu1 %v1065_v20, 256  ;;  %1088 = vbcast.lane.b32.xlu0 %v1086_v21, 256 }
  0x69   : > { %1081 = vbcast.lane.b32.xlu1 %v1079_v23, 256 }
  0x6d   : > { %1095 = vbcast.lane.b32.xlu1 %v1093_v25, 256 }
  0xcf   : > { %v3525_v42 = vpop.permute.xlu0 %1053  ;;  %v3563_v5 = vpop.permute.xlu1 %1046 }
  0xd3   : > { %v3551_v60 = vpop.permute.xlu0 %1074 }
  0xd7   : > { %v3601_v32 = vpop.permute.xlu0 %1088 }
 0x12f   : > { %v2956_v26 = vpop.f32.mrb[0].mxu0 }
 0x130   : > { %727 = vrot.lane.b32.xlu0 %v2956_v26, %s3278_s16  ;;  %v345_v27 = vpop.f32.mrb[1].mxu0  ;;  %v418_v34 = vcombine.high %v2956_v26, %v2956_v26  ;;  %v425_v35 = vrot.slane %v2956_v26, %v3516_v33 }
 0x131   : > { %v369_v36 = vcombine.high %v345_v27, %v345_v27  ;;  %v376_v39 = vrot.slane %v345_v27, %v3516_v33 }
 0x132   : > { %v432_v37 = vrot.slane %v418_v34, %v3516_v33  ;;  %v433_v38 = vcombine.high %v425_v35, %v425_v35  ;;  %v3523_v41 = vrot.slane %v425_v35, %v3516_v33 }
 0x133   : > { %v2959_v28 = vpop.f32.mrb[2].mxu0  ;;  %v383_v40 = vrot.slane %v369_v36, %v3516_v33  ;;  %v384_v48 = vcombine.high %v376_v39, %v376_v39  ;;  %v3537_v51 = vrot.slane %v376_v39, %v3516_v33 }
 0x134   : > { %725 = vrot.lane.b32.xlu0 %v345_v27, %s3278_s16  ;;  %v355_v29 = vpop.f32.mrb[3].mxu0  ;;  %731 = vrot.lane.b32.xlu1 %v2959_v28, %s3278_s16  ;;  %v434_v43 = vcombine.high %v432_v37, %v432_v37  ;;  %v516_v44 = vcombine.high %v2959_v28, %v2959_v28  ;;  %v523_v45 = vrot.slane %v2959_v28, %v3516_v33 }
 0x135   : > { %v3529_v46 = vrot.slane %v433_v38, %v3516_v33  ;;  %v3532_v47 = vrot.slane %v432_v37, %v3516_v33  ;;  %v385_v49 = vcombine.high %v383_v40, %v383_v40  ;;  %v463_v50 = vcombine.high %v3523_v41, %v3523_v41  ;;  %v3610_v38 = vpop.permute.xlu1 %1060 }
 0x136   : > { %v3540_v52 = vrot.slane %v434_v43, %v3516_v33  ;;  %v530_v53 = vrot.slane %v516_v44, %v3516_v33  ;;  %v531_v54 = vcombine.high %v523_v45, %v523_v45  ;;  %v467_v55 = vcombine.high %v355_v29, %v355_v29 }
 0x137   : > { %v465_v56 = vcombine.high %v3529_v46, %v3529_v46  ;;  %v600_v57 = vrot.slane %v3523_v41, %v3473_v2  ;;  %v3548_v58 = vrot.slane %v383_v40, %v3516_v33  ;;  %v474_v59 = vrot.slane %v355_v29, %v3516_v33 }
 0x138   : > { %729 = vrot.lane.b32.xlu1 %v355_v29, %s3278_s16  ;;  %v464_v61 = vcombine.high %v3532_v47, %v3532_v47  ;;  %v604_v62 = vrot.slane %v3529_v46, %v3473_v2  ;;  %v3558_v63 = vrot.slane %v384_v48, %v3516_v33  ;;  %v3561_v4 = vrot.slane %v385_v49, %v3516_v33 }
 0x139   : > { %v608_v6 = vrot.slane %v463_v50, %v3473_v2  ;;  %v616_v7 = vrot.slane %v3532_v47, %v3473_v2  ;;  %v414_v10 = vcombine.high %v3537_v51, %v3537_v51  ;;  %v3571_v11 = vrot.slane %v523_v45, %v3516_v33 }
 0x13a   : > { %v466_v12 = vcombine.high %v3540_v52, %v3540_v52  ;;  %v532_v13 = vcombine.high %v530_v53, %v530_v53  ;;  %v3576_v14 = vrot.slane %v531_v54, %v3516_v33  ;;  %v481_v15 = vrot.slane %v467_v55, %v3516_v33  ;;  %v3675_v55 = vld [vmem:[%s4500_s3] ss:$0 sm:$0xff] }
 0x13b   : > { %v612_v16 = vrot.slane %v465_v56, %v3473_v2  ;;  %v620_v19 = vrot.slane %v3540_v52, %v3473_v2  ;;  %v3583_v20 = vrot.slane %v530_v53, %v3516_v33  ;;  %v482_v21 = vcombine.high %v474_v59, %v474_v59 }
 0x13c   : > { %v624_v23 = vrot.slane %v464_v61, %v3473_v2  ;;  %v415_v25 = vcombine.high %v3548_v58, %v3548_v58  ;;  %v416_v26 = vcombine.high %v3558_v63, %v3558_v63  ;;  %v417_v27 = vcombine.high %v3561_v4, %v3561_v4 }
 0x13d   : > { %v568_v28 = vrot.slane %v3537_v51, %v3473_v2  ;;  %v572_v29 = vrot.slane %v3558_v63, %v3473_v2  ;;  %v3597_v30 = vrot.slane %v414_v10, %v3473_v2  ;;  %v561_v31 = vcombine.high %v3571_v11, %v3571_v11 }
 0x13e   : > { %v584_v34 = vrot.slane %v3548_v58, %v3473_v2  ;;  %v3606_v35 = vrot.slane %v532_v13, %v3516_v33  ;;  %v563_v36 = vcombine.high %v3576_v14, %v3576_v14  ;;  %v483_v37 = vcombine.high %v481_v15, %v481_v15 }
 0x13f   : > { %v562_v40 = vcombine.high %v3583_v20, %v3583_v20  ;;  %v3617_v41 = vrot.slane %v481_v15, %v3516_v33  ;;  %v3620_v43 = vrot.slane %v482_v21, %v3516_v33  ;;  %v3623_v44 = vrot.slane %v416_v26, %v3473_v2  ;;  %v3664_v15 = vld [vmem:[%s4499_s2] ss:$0 sm:$0xff] }
 0x140   : > { %v3626_v45 = vrot.slane %v415_v25, %v3473_v2  ;;  %v628_v46 = vrot.slane %v466_v12, %v3473_v2  ;;  %v3630_v47 = vrot.slane %v417_v27, %v3473_v2  ;;  %v3637_v50 = vrot.slane %v561_v31, %v3473_v2 }
 0x141   : > { %v3640_v52 = vrot.slane %v474_v59, %v3516_v33  ;;  %v3645_v54 = vrot.slane %v563_v36, %v3473_v2  ;;  %v3650_v56 = vrot.slane %v483_v37, %v3516_v33  ;;  %v3655_v10 = vrot.slane %v562_v40, %v3473_v2  ;;  %v3666_v33 = vpop.permute.xlu1 %1067 }
 0x142   : > { %v514_v12 = vcombine.high %v3620_v43, %v3620_v43 }
 0x1a2   : > { %v728_v13 = vpop.permute.xlu0 %727 }
 0x1a3   : > { %v746_v21 = vadd.f32 %v728_v13, %v604_v62  ;;  %v745_v25 = vadd.f32 %v728_v13, %v600_v57  ;;  %v747_v26 = vadd.f32 %v728_v13, %v608_v6  ;;  %v749_v27 = vadd.f32 %v728_v13, %v616_v7 }
 0x1a4   : > { %v748_v31 = vadd.f32 %v728_v13, %v612_v16  ;;  %v751_v36 = vadd.f32 %v728_v13, %v624_v23  ;;  %v750_v37 = vadd.f32 %v728_v13, %v620_v19  ;;  %v752_v40 = vadd.f32 %v728_v13, %v628_v46  ;;  %v3681_v13 = vpop.permute.xlu1 %1081 }
 0x1a5   : > { %v784_v0 = vadd.f32 %v3664_v15, %v746_v21  ;;  %v783_v53 = vadd.f32 %v3664_v15, %v745_v25  ;;  %v785_v59 = vadd.f32 %v3664_v15, %v747_v26  ;;  %v787_v61 = vadd.f32 %v3664_v15, %v749_v27 }
 0x1a6   : > { %v786_v57 = vadd.f32 %v3664_v15, %v748_v31  ;;  %v789_v62 = vadd.f32 %v3664_v15, %v751_v36  ;;  %v788_v6 = vadd.f32 %v3664_v15, %v750_v37  ;;  %v790_v7 = vadd.f32 %v3664_v15, %v752_v40  ;;  %v3685_v40 = vpop.permute.xlu0 %725 }
 0x1a7   : > { %vm816_vm2 = vcmp.gt.f32.partialorder %v784_v0, 0.0  ;;  %v848_v16 = vmul.f32 0.2, %v784_v0  ;;  %vm815_vm3 = vcmp.gt.f32.partialorder %v783_v53, 0.0  ;;  %v847_v19 = vmul.f32 0.2, %v783_v53 }
 0x1a8   : > { %vm817_vm4 = vcmp.gt.f32.partialorder %v785_v59, 0.0  ;;  %v849_v23 = vmul.f32 0.2, %v785_v59  ;;  %vm819_vm5 = vcmp.gt.f32.partialorder %v787_v61, 0.0  ;;  %v851_v46 = vmul.f32 0.2, %v787_v61 }
 0x1a9   : > { %v880_v21 = vsel %vm816_vm2, %v784_v0, %v848_v16  ;;  %v879_v25 = vsel %vm815_vm3, %v783_v53, %v847_v19  ;;  %vm818_vm6 = vcmp.gt.f32.partialorder %v786_v57, 0.0  ;;  %v850_v26 = vmul.f32 0.2, %v786_v57 }
 0x1aa   : > { %v919_v27 = vmul.f32 %v3675_v55, %v880_v21  ;;  %v918_v31 = vmul.f32 %v3675_v55, %v879_v25  ;;  %v881_v36 = vsel %vm817_vm4, %v785_v59, %v849_v23  ;;  %v883_v37 = vsel %vm819_vm5, %v787_v61, %v851_v46  ;;  %v3700_v25 = vpop.permute.xlu1 %1095 }
 0x1ab   : > { %v920_v49 = vmul.f32 %v3675_v55, %v881_v36  ;;  %v922_v39 = vmul.f32 %v3675_v55, %v883_v37  ;;  %v882_v48 = vsel %vm818_vm6, %v786_v57, %v850_v26  ;;  %vm821_vm7 = vcmp.gt.f32.partialorder %v789_v62, 0.0 }
 0x1ac   : > { %v632_v0 = vrot.slane %v3640_v52, %v3473_v2  ;;  %v970_v53 = vsel %vm942_vm1, %v919_v27, 0.0  ;;  %v967_v16 = vsel %vm942_vm1, %v918_v31, 0.0  ;;  %v853_v19 = vmul.f32 0.2, %v789_v62 }
 0x1ad   : > { %971 = vadd.xlane.f32.xlu0 %v970_v53  ;;  %968 = vadd.xlane.f32.xlu1 %v967_v16  ;;  %v973_v61 = vsel %vm942_vm1, %v920_v49, 0.0  ;;  %v921_v59 = vmul.f32 %v3675_v55, %v882_v48  ;;  %vm820_vm8 = vcmp.gt.f32.partialorder %v788_v6, 0.0  ;;  %v852_v23 = vmul.f32 0.2, %v788_v6 }
 0x1ae   : > { %v979_v46 = vsel %vm942_vm1, %v922_v39, 0.0  ;;  %v885_v57 = vsel %vm821_vm7, %v789_v62, %v853_v19  ;;  %v738_v21 = vadd.f32 %v3685_v40, %v572_v29  ;;  %vm822_vm9 = vcmp.gt.f32.partialorder %v790_v7, 0.0 }
 0x1af   : > { %v924_v26 = vmul.f32 %v3675_v55, %v885_v57  ;;  %v884_v27 = vsel %vm820_vm8, %v788_v6, %v852_v23  ;;  %v854_v31 = vmul.f32 0.2, %v790_v7  ;;  %v741_v48 = vadd.f32 %v3685_v40, %v584_v34 }
 0x1b0   : > { %v923_v39 = vmul.f32 %v3675_v55, %v884_v27  ;;  %v776_v49 = vadd.f32 %v3664_v15, %v738_v21  ;;  %v737_v63 = vadd.f32 %v3685_v40, %v568_v28  ;;  %v743_v29 = vadd.f32 %v3685_v40, %v3626_v45 }
 0x1b1   : > { %v648_v62 = vrot.slane %v3617_v41, %v3473_v2  ;;  %974 = vadd.xlane.f32.xlu0 %v973_v61  ;;  %980 = vadd.xlane.f32.xlu1 %v979_v46  ;;  %v976_v58 = vsel %vm942_vm1, %v921_v59, 0.0  ;;  %v779_v34 = vadd.f32 %v3664_v15, %v741_v48  ;;  %v739_v6 = vadd.f32 %v3685_v40, %v3597_v30  ;;  %v3729_v59 = vpop.permute.xlu1 %731 }
 0x1b2   : > { %v985_v36 = vsel %vm942_vm1, %v924_v26, 0.0  ;;  %vm808_vm10 = vcmp.gt.f32.partialorder %v776_v49, 0.0  ;;  %v840_v51 = vmul.f32 0.2, %v776_v49  ;;  %v886_v28 = vsel %vm822_vm9, %v790_v7, %v854_v31 }
 0x1b3   : > { %vm811_vm11 = vcmp.gt.f32.partialorder %v779_v34, 0.0  ;;  %v843_v45 = vmul.f32 0.2, %v779_v34  ;;  %v775_v37 = vadd.f32 %v3664_v15, %v737_v63  ;;  %v781_v53 = vadd.f32 %v3664_v15, %v743_v29 }
 0x1b4   : > { %v982_v16 = vsel %vm942_vm1, %v923_v39, 0.0  ;;  %v872_v19 = vsel %vm808_vm10, %v776_v49, %v840_v51  ;;  %v777_v61 = vadd.f32 %v3664_v15, %v739_v6  ;;  %v744_v30 = vadd.f32 %v3685_v40, %v3630_v47 }
 0x1b5   : > { %977 = vadd.xlane.f32.xlu0 %v976_v58  ;;  %986 = vadd.xlane.f32.xlu1 %v985_v36  ;;  %v911_v7 = vmul.f32 %v3675_v55, %v872_v19  ;;  %v875_v23 = vsel %vm811_vm11, %v779_v34, %v843_v45  ;;  %vm807_vm12 = vcmp.gt.f32.partialorder %v775_v37, 0.0  ;;  %v839_v46 = vmul.f32 0.2, %v775_v37  ;;  %v3750_v45 = vpop.permute.xlu1 %729 }
 0x1b6   : > { %v925_v57 = vmul.f32 %v3675_v55, %v886_v28  ;;  %vm813_vm13 = vcmp.gt.f32.partialorder %v781_v53, 0.0  ;;  %v845_v21 = vmul.f32 0.2, %v781_v53  ;;  %vm809_vm14 = vcmp.gt.f32.partialorder %v777_v61, 0.0 }
 0x1b7   : > { %v914_v26 = vmul.f32 %v3675_v55, %v875_v23  ;;  %v871_v27 = vsel %vm807_vm12, %v775_v37, %v839_v46  ;;  %v841_v31 = vmul.f32 0.2, %v777_v61  ;;  %v782_v47 = vadd.f32 %v3664_v15, %v744_v30 }
 0x1b8   : > { %v946_v48 = vsel %vm942_vm1, %v911_v7, 0.0  ;;  %v910_v39 = vmul.f32 %v3675_v55, %v871_v27  ;;  %v877_v49 = vsel %vm813_vm13, %v781_v53, %v845_v21  ;;  %v740_v63 = vadd.f32 %v3685_v40, %v3623_v44 }
 0x1b9   : > { %v644_v29 = vrot.slane %v514_v12, %v3473_v2  ;;  %983 = vadd.xlane.f32.xlu0 %v982_v16  ;;  %947 = vadd.xlane.f32.xlu1 %v946_v48  ;;  %v873_v58 = vsel %vm809_vm14, %v777_v61, %v841_v31  ;;  %vm814_vm15 = vcmp.gt.f32.partialorder %v782_v47, 0.0  ;;  %v846_v34 = vmul.f32 0.2, %v782_v47 }
 0x1ba   : > { %v988_v6 = vsel %vm942_vm1, %v925_v57, 0.0  ;;  %v916_v36 = vmul.f32 %v3675_v55, %v877_v49  ;;  %v778_v51 = vadd.f32 %v3664_v15, %v740_v63  ;;  %v4518_v28 = vrot.slane %v3571_v11, %v3473_v2 }
 0x1bb   : > { %v955_v12 = vsel %vm942_vm1, %v914_v26, 0.0  ;;  %v878_v37 = vsel %vm814_vm15, %v782_v47, %v846_v34  ;;  %v4519_v53 = vrot.slane %v3561_v4, %v3473_v2  ;;  %v763_v19 = vadd.f32 %v3729_v59, %v3637_v50 }
 0x1bc   : > { %v761_v44 = vadd.f32 %v3729_v59, %v4518_v28  ;;  %v943_v61 = vsel %vm942_vm1, %v910_v39, 0.0  ;;  %v912_v30 = vmul.f32 %v3675_v55, %v873_v58  ;;  %vm810_vm2 = vcmp.gt.f32.partialorder %v778_v51, 0.0 }
 0x1bd   : > { %v742_v16 = vadd.f32 %v3685_v40, %v4519_v53  ;;  %v842_v11 = vmul.f32 0.2, %v778_v51  ;;  %989 = vadd.xlane.f32.xlu0 %v988_v6  ;;  %956 = vadd.xlane.f32.xlu1 %v955_v12  ;;  %v801_v46 = vadd.f32 %v3664_v15, %v763_v19  ;;  %v961_v4 = vsel %vm942_vm1, %v916_v36, 0.0 }
 0x1be   : > { %v799_v7 = vadd.f32 %v3664_v15, %v761_v44  ;;  %v917_v40 = vmul.f32 %v3675_v55, %v878_v37  ;;  %v4520_v50 = vrot.slane %v3576_v14, %v3473_v2  ;;  %v753_v21 = vadd.f32 %v3750_v45, %v632_v0 }
 0x1bf   : > { %v780_v23 = vadd.f32 %v3664_v15, %v742_v16  ;;  %v3280_v26 = vmov 0   ;;  %v874_v27 = vsel %vm810_vm2, %v778_v51, %v842_v11  ;;  %vm833_vm5 = vcmp.gt.f32.partialorder %v801_v46, 0.0 }
 0x1c0   : > { %v762_v57 = vadd.f32 %v3729_v59, %v4520_v50  ;;  %3051 = vset.pattern.permute.xlu0 %v3280_v26  ;;  %3050 = vset.pattern.permute.xlu1 %v3280_v26  ;;  %vm831_vm3 = vcmp.gt.f32.partialorder %v799_v7, 0.0  ;;  %v863_v31 = vmul.f32 0.2, %v799_v7  ;;  %v865_v48 = vmul.f32 0.2, %v801_v46 }
 0x1c1   : > { %vm812_vm4 = vcmp.gt.f32.partialorder %v780_v23, 0.0  ;;  %v844_v47 = vmul.f32 0.2, %v780_v23  ;;  %944 = vadd.xlane.f32.xlu0 %v943_v61  ;;  %962 = vadd.xlane.f32.xlu1 %v961_v4  ;;  %v791_v49 = vadd.f32 %v3664_v15, %v753_v21  ;;  %v764_v0 = vadd.f32 %v3729_v59, %v3645_v54 }
 0x1c2   : > { %v800_v39 = vadd.f32 %v3664_v15, %v762_v57  ;;  %v895_v14 = vsel %vm831_vm3, %v799_v7, %v863_v31  ;;  %v949_v63 = vsel %vm942_vm1, %v912_v30, 0.0  ;;  %v964_v58 = vsel %vm942_vm1, %v917_v40, 0.0 }
 0x1c3   : > { %v913_v34 = vmul.f32 %v3675_v55, %v874_v27  ;;  %v876_v6 = vsel %vm812_vm4, %v780_v23, %v844_v47  ;;  %v897_v36 = vsel %vm833_vm5, %v801_v46, %v865_v48  ;;  %vm823_vm7 = vcmp.gt.f32.partialorder %v791_v49, 0.0 }
 0x1c4   : > { %vm832_vm6 = vcmp.gt.f32.partialorder %v800_v39, 0.0  ;;  %v864_v51 = vmul.f32 0.2, %v800_v39  ;;  %v934_v28 = vmul.f32 %v3675_v55, %v895_v14  ;;  %v855_v44 = vmul.f32 0.2, %v791_v49 }
 0x1c5   : > { %v802_v12 = vadd.f32 %v3664_v15, %v764_v0  ;;  %v756_v37 = vadd.f32 %v3750_v45, %v644_v29  ;;  %v652_v54 = vrot.slane %v3650_v56, %v3473_v2  ;;  %950 = vadd.xlane.f32.xlu0 %v949_v63  ;;  %965 = vadd.xlane.f32.xlu1 %v964_v58  ;;  %v952_v61 = vsel %vm942_vm1, %v913_v34, 0.0 }
 0x1c6   : > { %v915_v53 = vmul.f32 %v3675_v55, %v876_v6  ;;  %v4521_v16 = vrot.slane %v3583_v20, %v3473_v2  ;;  %v936_v30 = vmul.f32 %v3675_v55, %v897_v36  ;;  %v896_v11 = vsel %vm832_vm6, %v800_v39, %v864_v51 }
 0x1c7   : > { %v887_v7 = vsel %vm823_vm7, %v791_v49, %v855_v44  ;;  %v866_v23 = vmul.f32 0.2, %v802_v12  ;;  %v794_v29 = vadd.f32 %v3664_v15, %v756_v37  ;;  %v757_v4 = vadd.f32 %v3750_v45, %v648_v62 }
 0x1c8   : > { %v765_v19 = vadd.f32 %v3729_v59, %v4521_v16  ;;  %v1015_v20 = vsel %vm942_vm1, %v934_v28, 0.0  ;;  %vm834_vm8 = vcmp.gt.f32.partialorder %v802_v12, 0.0  ;;  %v4522_v40 = vrot.slane %v3606_v35, %v3473_v2 }
 0x1c9   : > { %v758_v57 = vadd.f32 %v3750_v45, %v652_v54  ;;  %v515_v21 = vcombine.high %v3650_v56, %v3650_v56  ;;  %953 = vadd.xlane.f32.xlu0 %v952_v61  ;;  %1016 = vadd.xlane.f32.xlu1 %v1015_v20  ;;  %v958_v26 = vsel %vm942_vm1, %v915_v53, 0.0  ;;  %vm826_vm9 = vcmp.gt.f32.partialorder %v794_v29, 0.0 }
 0x1ca   : > { %v803_v46 = vadd.f32 %v3664_v15, %v765_v19  ;;  %v766_v50 = vadd.f32 %v3729_v59, %v4522_v40  ;;  %v858_v27 = vmul.f32 0.2, %v794_v29  ;;  %v1021_v62 = vsel %vm942_vm1, %v936_v30, 0.0 }
 0x1cb   : > { %v935_v31 = vmul.f32 %v3675_v55, %v896_v11  ;;  %v926_v47 = vmul.f32 %v3675_v55, %v887_v7  ;;  %v795_v48 = vadd.f32 %v3664_v15, %v757_v4  ;;  %v898_v39 = vsel %vm834_vm8, %v802_v12, %v866_v23 }
 0x1cc   : > { %vm835_vm10 = vcmp.gt.f32.partialorder %v803_v46, 0.0  ;;  %v867_v14 = vmul.f32 0.2, %v803_v46  ;;  %v804_v49 = vadd.f32 %v3664_v15, %v766_v50  ;;  %v890_v56 = vsel %vm826_vm9, %v794_v29, %v858_v27 }
 0x1cd   : > { %v859_v0 = vmul.f32 0.2, %v795_v48  ;;  %v796_v63 = vadd.f32 %v3664_v15, %v758_v57  ;;  %v767_v58 = vadd.f32 %v3729_v59, %v3655_v10  ;;  %v512_v34 = vcombine.high %v3640_v52, %v3640_v52  ;;  %959 = vadd.xlane.f32.xlu0 %v958_v26  ;;  %1022 = vadd.xlane.f32.xlu1 %v1021_v62 }
 0x1ce   : > { %v4523_v6 = vcombine.high %v3617_v41, %v3617_v41  ;;  %vm827_vm11 = vcmp.gt.f32.partialorder %v795_v48, 0.0  ;;  %v4524_v51 = vcombine.high %v3606_v35, %v3606_v35  ;;  %v1018_v44 = vsel %vm942_vm1, %v935_v31, 0.0 }
 0x1cf   : > { %v991_v10 = vsel %vm942_vm1, %v926_v47, 0.0  ;;  %v937_v12 = vmul.f32 %v3675_v55, %v898_v39  ;;  %v660_v52 = vrot.slane %v515_v21, %v3473_v2  ;;  %v929_v37 = vmul.f32 %v3675_v55, %v890_v56 }
 0x1d0   : > { %v656_v36 = vrot.slane %v4523_v6, %v3473_v2  ;;  %v692_v28 = vrot.slane %v4524_v51, %v3473_v2  ;;  %v899_v41 = vsel %vm835_vm10, %v803_v46, %v867_v14  ;;  %v868_v54 = vmul.f32 0.2, %v804_v49 }
 0x1d1   : > { %v891_v16 = vsel %vm827_vm11, %v795_v48, %v859_v0  ;;  %vm836_vm12 = vcmp.gt.f32.partialorder %v804_v49, 0.0  ;;  %v860_v19 = vmul.f32 0.2, %v796_v63  ;;  %v805_v35 = vadd.f32 %v3664_v15, %v767_v58  ;;  %1019 = vadd.xlane.f32.xlu0 %v1018_v44  ;;  %992 = vadd.xlane.f32.xlu1 %v991_v10 }
 0x1d2   : > { %v759_v53 = vadd.f32 %v3750_v45, %v656_v36  ;;  %vm828_vm13 = vcmp.gt.f32.partialorder %v796_v63, 0.0  ;;  %v768_v30 = vadd.f32 %v3729_v59, %v692_v28  ;;  %v636_v11 = vrot.slane %v3620_v43, %v3473_v2 }
 0x1d3   : > { %v640_v7 = vrot.slane %v512_v34, %v3473_v2  ;;  %v1024_v23 = vsel %vm942_vm1, %v937_v12, 0.0  ;;  %v760_v29 = vadd.f32 %v3750_v45, %v660_v52  ;;  %v1000_v46 = vsel %vm942_vm1, %v929_v37, 0.0 }
 0x1d4   : > { %v797_v61 = vadd.f32 %v3664_v15, %v759_v53  ;;  %v938_v4 = vmul.f32 %v3675_v55, %v899_v41  ;;  %v930_v20 = vmul.f32 %v3675_v55, %v891_v16  ;;  %v900_v40 = vsel %vm836_vm12, %v804_v49, %v868_v54 }
 0x1d5   : > { %v892_v50 = vsel %vm828_vm13, %v796_v63, %v860_v19  ;;  %v869_v57 = vmul.f32 0.2, %v805_v35  ;;  %v754_v59 = vadd.f32 %v3750_v45, %v636_v11  ;;  %v755_v21 = vadd.f32 %v3750_v45, %v640_v7  ;;  %1025 = vadd.xlane.f32.xlu0 %v1024_v23  ;;  %1001 = vadd.xlane.f32.xlu1 %v1000_v46 }
 0x1d6   : > { %vm837_vm14 = vcmp.gt.f32.partialorder %v805_v35, 0.0  ;;  %v861_v43 = vmul.f32 0.2, %v797_v61  ;;  %v806_v26 = vadd.f32 %v3664_v15, %v768_v30  ;;  %v798_v27 = vadd.f32 %v3664_v15, %v760_v29 }
 0x1d7   : > { %vm829_vm15 = vcmp.gt.f32.partialorder %v797_v61, 0.0  ;;  %v1027_v62 = vsel %vm942_vm1, %v938_v4, 0.0  ;;  %v939_v31 = vmul.f32 %v3675_v55, %v900_v40  ;;  %v793_v47 = vadd.f32 %v3664_v15, %v755_v21 }
 0x1d8   : > { %v1003_v48 = vsel %vm942_vm1, %v930_v20, 0.0  ;;  %v931_v39 = vmul.f32 %v3675_v55, %v892_v50  ;;  %v901_v45 = vsel %vm837_vm14, %v805_v35, %v869_v57  ;;  %v792_v14 = vadd.f32 %v3664_v15, %v754_v59 }
 0x1d9   : > { %1028 = vadd.xlane.f32.xlu0 %v1027_v62  ;;  %1004 = vadd.xlane.f32.xlu1 %v1003_v48  ;;  %v893_v49 = vsel %vm829_vm15, %v797_v61, %v861_v43  ;;  %v870_v56 = vmul.f32 0.2, %v806_v26  ;;  %v862_v0 = vmul.f32 0.2, %v798_v27  ;;  %vm825_vm2 = vcmp.gt.f32.partialorder %v793_v47, 0.0 }
 0x1da   : > { %vm838_vm3 = vcmp.gt.f32.partialorder %v806_v26, 0.0  ;;  %vm830_vm4 = vcmp.gt.f32.partialorder %v798_v27, 0.0  ;;  %v857_v63 = vmul.f32 0.2, %v793_v47  ;;  %v1030_v58 = vsel %vm942_vm1, %v939_v31, 0.0 }
 0x1db   : > { %v1006_v34 = vsel %vm942_vm1, %v931_v39, 0.0  ;;  %v940_v6 = vmul.f32 %v3675_v55, %v901_v45  ;;  %v932_v36 = vmul.f32 %v3675_v55, %v893_v49  ;;  %v902_v15 = vsel %vm838_vm3, %v806_v26, %v870_v56 }
 0x1dc   : > { %v889_v51 = vsel %vm825_vm2, %v793_v47, %v857_v63  ;;  %v894_v28 = vsel %vm830_vm4, %v798_v27, %v862_v0  ;;  %v856_v44 = vmul.f32 0.2, %v792_v14  ;;  %vm824_vm5 = vcmp.gt.f32.partialorder %v792_v14, 0.0 }
 0x1dd   : > { %1031 = vadd.xlane.f32.xlu0 %v1030_v58  ;;  %1007 = vadd.xlane.f32.xlu1 %v1006_v34  ;;  %v928_v10 = vmul.f32 %v3675_v55, %v889_v51  ;;  %v1033_v52 = vsel %vm942_vm1, %v940_v6, 0.0  ;;  %v1009_v37 = vsel %vm942_vm1, %v932_v36, 0.0  ;;  %v941_v41 = vmul.f32 %v3675_v55, %v902_v15 }
 0x1de   : > { %v933_v54 = vmul.f32 %v3675_v55, %v894_v28  ;;  %v888_v53 = vsel %vm824_vm5, %v792_v14, %v856_v44  ;;  %vm1397_vm6 = vcmask 1042434   ;;  %vm1399_vm7 = vcmask 1043459  }
 0x1df   : > { %v997_v12 = vsel %vm942_vm1, %v928_v10, 0.0  ;;  %v1036_v16 = vsel %vm942_vm1, %v941_v41, 0.0  ;;  %v927_v35 = vmul.f32 %v3675_v55, %v888_v53  ;;  %vm1401_vm8 = vcmask 1044484  }
 0x1e0   : > { %v1012_v19 = vsel %vm942_vm1, %v933_v54, 0.0  ;;  %vm1403_vm9 = vcmask 1045509   ;;  %vm1405_vm10 = vcmask 1046534   ;;  %vm1407_vm11 = vcmask 1047559  }
 0x1e1   : > { %1034 = vadd.xlane.f32.xlu0 %v1033_v52  ;;  %1010 = vadd.xlane.f32.xlu1 %v1009_v37  ;;  %v994_v61 = vsel %vm942_vm1, %v927_v35, 0.0  ;;  %vm1395_vm1 = vcmask 1041409   ;;  %vm1434_vm12 = vcmask 64512   ;;  %vm3282_vm13 = vmmov 0  }
 0x1e5   : > { %1037 = vadd.xlane.f32.xlu0 %v1036_v16  ;;  %1013 = vadd.xlane.f32.xlu1 %v1012_v19 }
 0x1e9   : > { %995 = vadd.xlane.f32.xlu0 %v994_v61 }
 0x1ed   : > { %998 = vadd.xlane.f32.xlu0 %v997_v12 }
 0x23a   : > { %v972_v30 = vpop.xlane.xlu0 %971  ;;  %v969_v11 = vpop.xlane.xlu1 %968 }
 0x23b   : > { %v3869_v7 = vadd.f32 %v3525_v42, %v972_v30  ;;  %v3872_v23 = vadd.f32 %v3563_v5, %v969_v11 }
 0x23d   : > { %1197 = vperm.xlu0 %3051, %v3869_v7   ;;  %1194 = vperm.xlu1 %3050, %v3872_v23  }
 0x23e   : > { %v975_v29 = vpop.xlane.xlu0 %974  ;;  %v981_v55 = vpop.xlane.xlu1 %980 }
 0x23f   : > { %v3877_v46 = vadd.f32 %v3610_v38, %v975_v29  ;;  %v3880_v4 = vadd.f32 %v3551_v60, %v981_v55 }
 0x241   : > { %1200 = vperm.xlu0 %3051, %v3877_v46   ;;  %1206 = vperm.xlu1 %3050, %v3880_v4  }
 0x242   : > { %v978_v20 = vpop.xlane.xlu0 %977  ;;  %v987_v40 = vpop.xlane.xlu1 %986 }
 0x243   : > { %v3885_v50 = vadd.f32 %v3666_v33, %v978_v20  ;;  %v3888_v57 = vadd.f32 %v3601_v32, %v987_v40 }
 0x245   : > { %1203 = vperm.xlu0 %3051, %v3885_v50   ;;  %1212 = vperm.xlu1 %3050, %v3888_v57  }
 0x246   : > { %v984_v59 = vpop.xlane.xlu0 %983  ;;  %v948_v21 = vpop.xlane.xlu1 %947 }
 0x247   : > { %v3893_v43 = vadd.f32 %v3681_v13, %v984_v59  ;;  %v3896_v26 = vadd.f32 %v3525_v42, %v948_v21 }
 0x249   : > { %1209 = vperm.xlu0 %3051, %v3893_v43   ;;  %1173 = vperm.xlu1 %3050, %v3896_v26  }
 0x24a   : > { %v990_v27 = vpop.xlane.xlu0 %989  ;;  %v957_v62 = vpop.xlane.xlu1 %956 }
 0x24b   : > { %v3901_v31 = vadd.f32 %v3700_v25, %v990_v27  ;;  %v3913_v63 = vadd.f32 %v3551_v60, %v957_v62 }
 0x24d   : > { %1215 = vperm.xlu0 %3051, %v3901_v31  }
 0x24e   : > { %v945_v47 = vpop.xlane.xlu0 %944  ;;  %v963_v48 = vpop.xlane.xlu1 %962 }
 0x24f   : > { %v3905_v39 = vadd.f32 %v3563_v5, %v945_v47  ;;  %v3921_v36 = vadd.f32 %v3601_v32, %v963_v48 }
 0x251   : > { %1170 = vperm.xlu0 %3051, %v3905_v39  }
 0x252   : > { %v951_v45 = vpop.xlane.xlu0 %950  ;;  %v966_v14 = vpop.xlane.xlu1 %965 }
 0x253   : > { %v3909_v49 = vadd.f32 %v3610_v38, %v951_v45  ;;  %v3929_v44 = vadd.f32 %v3700_v25, %v966_v14 }
 0x255   : > { %1176 = vperm.xlu1 %3050, %v3909_v49  }
 0x256   : > { %v954_v56 = vpop.xlane.xlu0 %953  ;;  %v1017_v0 = vpop.xlane.xlu1 %1016 }
 0x257   : > { %v3916_v58 = vadd.f32 %v3666_v33, %v954_v56  ;;  %v3937_v52 = vadd.f32 %v3563_v5, %v1017_v0 }
 0x259   : > { %1179 = vperm.xlu0 %3051, %v3916_v58   ;;  %1182 = vperm.xlu1 %3050, %v3913_v63  }
 0x25a   : > { %v960_v34 = vpop.xlane.xlu0 %959  ;;  %v1023_v6 = vpop.xlane.xlu1 %1022 }
 0x25b   : > { %v3924_v51 = vadd.f32 %v3681_v13, %v960_v34  ;;  %v3945_v53 = vadd.f32 %v3610_v38, %v1023_v6 }
 0x25d   : > { %1185 = vperm.xlu0 %3051, %v3924_v51   ;;  %1188 = vperm.xlu1 %3050, %v3921_v36  }
 0x25e   : > { %v1020_v15 = vpop.xlane.xlu0 %1019  ;;  %v993_v28 = vpop.xlane.xlu1 %992 }
 0x25f   : > { %v3932_v10 = vadd.f32 %v3525_v42, %v1020_v15  ;;  %v3953_v61 = vadd.f32 %v3563_v5, %v993_v28 }
 0x261   : > { %1245 = vperm.xlu0 %3051, %v3932_v10   ;;  %1191 = vperm.xlu1 %3050, %v3929_v44  }
 0x262   : > { %v1026_v12 = vpop.xlane.xlu0 %1025  ;;  %v1002_v41 = vpop.xlane.xlu1 %1001 }
 0x263   : > { %v3940_v37 = vadd.f32 %v3666_v33, %v1026_v12  ;;  %v3961_v29 = vadd.f32 %v3666_v33, %v1002_v41 }
 0x265   : > { %1251 = vperm.xlu0 %3051, %v3940_v37   ;;  %1242 = vperm.xlu1 %3050, %v3937_v52  }
 0x266   : > { %v1029_v54 = vpop.xlane.xlu0 %1028  ;;  %v1005_v19 = vpop.xlane.xlu1 %1004 }
 0x267   : > { %v3948_v16 = vadd.f32 %v3551_v60, %v1029_v54  ;;  %v3965_v40 = vadd.f32 %v3551_v60, %v1005_v19 }
 0x269   : > { %1254 = vperm.xlu0 %3051, %v3948_v16   ;;  %1248 = vperm.xlu1 %3050, %v3945_v53  }
 0x26a   : > { %v1032_v35 = vpop.xlane.xlu0 %1031  ;;  %v1008_v55 = vpop.xlane.xlu1 %1007 }
 0x26b   : > { %v3956_v30 = vadd.f32 %v3681_v13, %v1032_v35  ;;  %v3969_v21 = vadd.f32 %v3681_v13, %v1008_v55 }
 0x26d   : > { %1257 = vperm.xlu0 %3051, %v3956_v30   ;;  %1218 = vperm.xlu1 %3050, %v3953_v61  }
 0x26e   : > { %v1035_v11 = vpop.xlane.xlu0 %1034  ;;  %v1011_v5 = vpop.xlane.xlu1 %1010 }
 0x26f   : > { %v3977_v62 = vadd.f32 %v3601_v32, %v1011_v5  ;;  %v3985_v13 = vadd.f32 %v3601_v32, %v1035_v11 }
 0x271   : > { %1227 = vperm.xlu1 %3050, %v3961_v29  }
 0x272   : > { %v1038_v20 = vpop.xlane.xlu0 %1037  ;;  %v1014_v47 = vpop.xlane.xlu1 %1013 }
 0x273   : > { %v3993_v48 = vadd.f32 %v3700_v25, %v1038_v20 }
 0x275   : > { %1230 = vperm.xlu1 %3050, %v3965_v40  }
 0x276   : > { %v996_v59 = vpop.xlane.xlu0 %995 }
 0x277   : > { %v3972_v27 = vadd.f32 %v3525_v42, %v996_v59  ;;  %v3988_v42 = vadd.f32 %v3700_v25, %v1014_v47 }
 0x279   : > { %1221 = vperm.xlu0 %3051, %v3972_v27   ;;  %1233 = vperm.xlu1 %3050, %v3969_v21  }
 0x27a   : > { %v999_v33 = vpop.xlane.xlu0 %998 }
 0x27b   : > { %v3980_v60 = vadd.f32 %v3610_v38, %v999_v33  ;;  %v4525_v38 = vlaneseq }
 0x27d   : > { %1224 = vperm.xlu0 %3051, %v3980_v60   ;;  %1236 = vperm.xlu1 %3050, %v3977_v62   ;;  %v1266_v45 = vand.u32 127, %v4525_v38 }
 0x27f   : > { %v3998_v56 = vsub.s32 %v1266_v45, %v3470_v1 }
 0x281   : > { %1260 = vperm.xlu0 %3051, %v3985_v13   ;;  %1239 = vperm.xlu1 %3050, %v3988_v42  }
 0x285   : > { %1263 = vperm.xlu0 %3051, %v3993_v48  }
 0x2bc   : > { %v1198_v14 = vpop.permute.xlu0 %1197  ;;  %v1195_v32 = vpop.permute.xlu1 %1194 }
 0x2bd   : > { %v1306_v34 = vrot.slane %v1198_v14, %v3998_v56  ;;  %v1302_v6 = vrot.slane %v1195_v32, %v3998_v56 }
 0x2bf   : > { %v1409_v12 = vsel %vm1395_vm1, %v1306_v34, %v1302_v6 }
 0x2c0   : > { %v1201_v0 = vpop.permute.xlu0 %1200  ;;  %v1207_v25 = vpop.permute.xlu1 %1206 }
 0x2c1   : > { %v1310_v15 = vrot.slane %v1201_v0, %v3998_v56  ;;  %v1318_v19 = vrot.slane %v1207_v25, %v3998_v56 }
 0x2c3   : > { %v1410_v1 = vsel %vm1397_vm6, %v1310_v15, %v1409_v12 }
 0x2c4   : > { %v1204_v28 = vpop.permute.xlu0 %1203  ;;  %v1213_v11 = vpop.permute.xlu1 %1212 }
 0x2c5   : > { %v1314_v41 = vrot.slane %v1204_v28, %v3998_v56  ;;  %v1326_v59 = vrot.slane %v1213_v11, %v3998_v56 }
 0x2c7   : > { %v1411_v54 = vsel %vm1399_vm7, %v1314_v41, %v1410_v1 }
 0x2c8   : > { %v1210_v35 = vpop.permute.xlu0 %1209  ;;  %v1412_v20 = vsel %vm1401_vm8, %v1318_v19, %v1411_v54  ;;  %v1174_v14 = vpop.permute.xlu1 %1173 }
 0x2c9   : > { %v1322_v55 = vrot.slane %v1210_v35, %v3998_v56  ;;  %v1274_v25 = vrot.slane %v1174_v14, %v3998_v56 }
 0x2cb   : > { %v1413_v5 = vsel %vm1403_vm9, %v1322_v55, %v1412_v20 }
 0x2cc   : > { %v1216_v33 = vpop.permute.xlu0 %1215  ;;  %v1414_v38 = vsel %vm1405_vm10, %v1326_v59, %v1413_v5 }
 0x2cd   : > { %v1330_v47 = vrot.slane %v1216_v33, %v3998_v56 }
 0x2cf   : > { %v1415_v45 = vsel %vm1407_vm11, %v1330_v47, %v1414_v38 }
 0x2d0   : > { %v1438_v32 = vsel %vm1434_vm12, %v1415_v45, -inf  ;;  %v1171_v0 = vpop.permute.xlu0 %1170 }
 0x2d1   : > { %1439 = vmax.xlane.f32.xlu0 %v1438_v32  ;;  %v1270_v6 = vrot.slane %v1171_v0, %v3998_v56 }
 0x2d3   : > { %v1396_v41 = vsel %vm1395_vm1, %v1274_v25, %v1270_v6 }
 0x2d4   : > { %v1177_v34 = vpop.permute.xlu1 %1176 }
 0x2d5   : > { %v1278_v15 = vrot.slane %v1177_v34, %v3998_v56 }
 0x2d7   : > { %v1398_v54 = vsel %vm1397_vm6, %v1278_v15, %v1396_v41 }
 0x2d8   : > { %v1180_v28 = vpop.permute.xlu0 %1179  ;;  %v1183_v12 = vpop.permute.xlu1 %1182 }
 0x2d9   : > { %v1282_v1 = vrot.slane %v1180_v28, %v3998_v56  ;;  %v1286_v19 = vrot.slane %v1183_v12, %v3998_v56 }
 0x2db   : > { %v1400_v35 = vsel %vm1399_vm7, %v1282_v1, %v1398_v54 }
 0x2dc   : > { %v1186_v11 = vpop.permute.xlu0 %1185  ;;  %v1189_v55 = vpop.permute.xlu1 %1188  ;;  %v1402_v5 = vsel %vm1401_vm8, %v1286_v19, %v1400_v35 }
 0x2dd   : > { %v1290_v20 = vrot.slane %v1186_v11, %v3998_v56  ;;  %v1294_v59 = vrot.slane %v1189_v55, %v3998_v56 }
 0x2df   : > { %v1404_v33 = vsel %vm1403_vm9, %v1290_v20, %v1402_v5 }
 0x2e0   : > { %v1192_v47 = vpop.permute.xlu1 %1191  ;;  %v1246_v45 = vpop.permute.xlu0 %1245  ;;  %v1406_v14 = vsel %vm1405_vm10, %v1294_v59, %v1404_v33 }
 0x2e1   : > { %v1298_v38 = vrot.slane %v1192_v47, %v3998_v56  ;;  %v1370_v55 = vrot.slane %v1246_v45, %v3998_v56 }
 0x2e3   : > { %v1408_v32 = vsel %vm1407_vm11, %v1298_v38, %v1406_v14 }
 0x2e4   : > { %v1243_v0 = vpop.permute.xlu1 %1242  ;;  %v1435_v34 = vsel %vm1434_vm12, %v1408_v32, -inf  ;;  %v1252_v6 = vpop.permute.xlu0 %1251 }
 0x2e5   : > { %1436 = vmax.xlane.f32.xlu1 %v1435_v34  ;;  %v1366_v54 = vrot.slane %v1243_v0, %v3998_v56  ;;  %v1378_v14 = vrot.slane %v1252_v6, %v3998_v56 }
 0x2e7   : > { %v1423_v5 = vsel %vm1395_vm1, %v1370_v55, %v1366_v54 }
 0x2e8   : > { %v1249_v15 = vpop.permute.xlu1 %1248  ;;  %v1255_v28 = vpop.permute.xlu0 %1254 }
 0x2e9   : > { %v1374_v19 = vrot.slane %v1249_v15, %v3998_v56 }
 0x2eb   : > { %v1424_v59 = vsel %vm1397_vm6, %v1374_v19, %v1423_v5  ;;  %v1382_v19 = vrot.slane %v1255_v28, %v3998_v56 }
 0x2ec   : > { %v1219_v25 = vpop.permute.xlu1 %1218  ;;  %v1258_v41 = vpop.permute.xlu0 %1257  ;;  %v1425_v45 = vsel %vm1399_vm7, %v1378_v14, %v1424_v59 }
 0x2ed   : > { %v1334_v33 = vrot.slane %v1219_v25, %v3998_v56  ;;  %v1386_v5 = vrot.slane %v1258_v41, %v3998_v56 }
 0x2f0   : > { %v1228_v12 = vpop.permute.xlu1 %1227 }
 0x2f1   : > { %v1346_v0 = vrot.slane %v1228_v12, %v3998_v56 }
 0x2f4   : > { %v1231_v1 = vpop.permute.xlu1 %1230 }
 0x2f5   : > { %v1350_v15 = vrot.slane %v1231_v1, %v3998_v56  ;;  %v1426_v1 = vsel %vm1401_vm8, %v1382_v19, %v1425_v45 }
 0x2f8   : > { %v1222_v35 = vpop.permute.xlu0 %1221  ;;  %v1234_v11 = vpop.permute.xlu1 %1233 }
 0x2f9   : > { %v1338_v20 = vrot.slane %v1222_v35, %v3998_v56  ;;  %v1354_v25 = vrot.slane %v1234_v11, %v3998_v56 }
 0x2fb   : > { %v1416_v34 = vsel %vm1395_vm1, %v1338_v20, %v1334_v33 }
 0x2fc   : > { %v1225_v47 = vpop.permute.xlu0 %1224  ;;  %v1237_v38 = vpop.permute.xlu1 %1236 }
 0x2fd   : > { %v1342_v32 = vrot.slane %v1225_v47, %v3998_v56  ;;  %v1358_v12 = vrot.slane %v1237_v38, %v3998_v56 }
 0x2ff   : > { %v1417_v54 = vsel %vm1397_vm6, %v1342_v32, %v1416_v34  ;;  %v1427_v32 = vsel %vm1403_vm9, %v1386_v5, %v1426_v1 }
 0x300   : > { %v1418_v35 = vsel %vm1399_vm7, %v1346_v0, %v1417_v54  ;;  %v1261_v55 = vpop.permute.xlu0 %1260  ;;  %v1240_v6 = vpop.permute.xlu1 %1239 }
 0x301   : > { %v1362_v20 = vrot.slane %v1240_v6, %v3998_v56  ;;  %v1419_v59 = vsel %vm1401_vm8, %v1350_v15, %v1418_v35  ;;  %v1390_v33 = vrot.slane %v1261_v55, %v3998_v56 }
 0x302   : > { %v1420_v28 = vsel %vm1403_vm9, %v1354_v25, %v1419_v59 }
 0x303   : > { %v1421_v11 = vsel %vm1405_vm10, %v1358_v12, %v1420_v28  ;;  %v1428_v0 = vsel %vm1405_vm10, %v1390_v33, %v1427_v32 }
 0x304   : > { %v1264_v47 = vpop.permute.xlu0 %1263  ;;  %v1422_v14 = vsel %vm1407_vm11, %v1362_v20, %v1421_v11 }
 0x305   : > { %v1394_v41 = vrot.slane %v1264_v47, %v3998_v56  ;;  %v1441_v38 = vsel %vm1434_vm12, %v1422_v14, -inf }
 0x306   : > { %1442 = vmax.xlane.f32.xlu0 %v1441_v38 }
 0x307   : > { %v1429_v34 = vsel %vm1407_vm11, %v1394_v41, %v1428_v0 }
 0x308   : > { %v1444_v45 = vsel %vm1434_vm12, %v1429_v34, -inf }
 0x309   : > { %1445 = vmax.xlane.f32.xlu1 %v1444_v45 }
 0x35e   : > { %v1440_v15 = vpop.xlane.xlu0 %1439 }
 0x35f   : > { %v1486_v54 = vrot.slane %v1440_v15, %v3473_v2  ;;  %v1490_v19 = vrot.slane %v1440_v15, %v3476_v3  ;;  %v1494_v25 = vrot.slane %v1440_v15, %v3481_v8  ;;  %v1502_v35 = vrot.slane %v1440_v15, %v3484_v9 }
 0x360   : > { %v1510_v55 = vrot.slane %v1440_v15, %v3499_v18  ;;  %v1498_v12 = vrot.slane %v1440_v15, %v3496_v17  ;;  %v1506_v47 = vrot.slane %v1440_v15, %v3507_v22  ;;  %v1514_v32 = vrot.slane %v1440_v15, %v3512_v24 }
 0x361   : > { %v1619_v6 = vsub.f32 %v3872_v23, %v1486_v54  ;;  %v1620_v5 = vsub.f32 %v3869_v7, %v1490_v19  ;;  %v1621_v20 = vsub.f32 %v3877_v46, %v1494_v25  ;;  %v1623_v59 = vsub.f32 %v3880_v4, %v1502_v35 }
 0x362   : > { %v1625_v28 = vsub.f32 %v3888_v57, %v1510_v55  ;;  %v1622_v14 = vsub.f32 %v3885_v50, %v1498_v12  ;;  %v1624_v46 = vsub.f32 %v3893_v43, %v1506_v47  ;;  %v1626_v41 = vsub.f32 %v3901_v31, %v1514_v32 }
 0x363   : > { %v1659_v1 = vmul.f32 1.442695, %v1619_v6  ;;  %v1661_v33 = vmul.f32 1.442695, %v1620_v5  ;;  %v1667_v11 = vmul.f32 1.442695, %v1623_v59 }
 0x364   : > { %v1663_v23 = vmul.f32 1.442695, %v1621_v20  ;;  %v1671_v7 = vmul.f32 1.442695, %v1625_v28  ;;  %v1665_v4 = vmul.f32 1.442695, %v1622_v14 }
 0x365   : > { %3052 = vpow2.f32 %v1659_v1  ;;  %v1669_v57 = vmul.f32 1.442695, %v1624_v46  ;;  %v1673_v50 = vmul.f32 1.442695, %v1626_v41 }
 0x366   : > { %3054 = vpow2.f32 %v1661_v33 }
 0x367   : > { %3056 = vpow2.f32 %v1667_v11 }
 0x368   : > { %3058 = vpow2.f32 %v1663_v23 }
 0x369   : > { %3060 = vpow2.f32 %v1671_v7 }
 0x36a   : > { %3062 = vpow2.f32 %v1665_v4 }
 0x36b   : > { %3064 = vpow2.f32 %v1669_v57 }
 0x36c   : > { %3066 = vpow2.f32 %v1673_v50 }
 0x36f   : > { %v4080_v38 = vpop.eup %3052 }
 0x370   : > { %v4082_v0 = vpop.eup %3054  ;;  %1764 = vperm.xlu1 %3050, %v4080_v38  }
 0x371   : > { %1767 = vperm.xlu0 %3051, %v4082_v0   ;;  %v4086_v45 = vpop.eup %3056 }
 0x372   : > { %v1437_v34 = vpop.xlane.xlu1 %1436  ;;  %v4092_v19 = vpop.eup %3058 }
 0x373   : > { %v1454_v43 = vrot.slane %v1437_v34, %v3473_v2  ;;  %v1458_v15 = vrot.slane %v1437_v34, %v3476_v3  ;;  %v1462_v31 = vrot.slane %v1437_v34, %v3481_v8  ;;  %v1466_v54 = vrot.slane %v1437_v34, %v3496_v17  ;;  %v4102_v20 = vpop.eup %3060 }
 0x374   : > { %1776 = vperm.xlu1 %3050, %v4086_v45   ;;  %v1470_v25 = vrot.slane %v1437_v34, %v3484_v9  ;;  %v1474_v5 = vrot.slane %v1437_v34, %v3507_v22  ;;  %v4104_v33 = vpop.eup %3062  ;;  %v1482_v14 = vrot.slane %v1437_v34, %v3512_v24 }
 0x375   : > { %v1611_v35 = vsub.f32 %v3905_v39, %v1454_v43  ;;  %v1612_v55 = vsub.f32 %v3896_v26, %v1458_v15  ;;  %v1613_v6 = vsub.f32 %v3909_v49, %v1462_v31  ;;  %1770 = vperm.xlu0 %3051, %v4092_v19   ;;  %v1614_v12 = vsub.f32 %v3916_v58, %v1466_v54  ;;  %v4111_v11 = vpop.eup %3064 }
 0x376   : > { %v1615_v39 = vsub.f32 %v3913_v63, %v1470_v25  ;;  %v1478_v49 = vrot.slane %v1437_v34, %v3499_v18  ;;  %v1616_v28 = vsub.f32 %v3924_v51, %v1474_v5  ;;  %v4116_v7 = vpop.eup %3066  ;;  %v1618_v51 = vsub.f32 %v3929_v44, %v1482_v14 }
 0x377   : > { %v1643_v59 = vmul.f32 1.442695, %v1611_v35  ;;  %v1645_v1 = vmul.f32 1.442695, %v1612_v55  ;;  %v1647_v26 = vmul.f32 1.442695, %v1613_v6 }
 0x378   : > { %1782 = vperm.xlu1 %3050, %v4102_v20   ;;  %v1649_v58 = vmul.f32 1.442695, %v1614_v12  ;;  %v1651_v47 = vmul.f32 1.442695, %v1615_v39  ;;  %v1617_v63 = vsub.f32 %v3921_v36, %v1478_v49  ;;  %v1653_v23 = vmul.f32 1.442695, %v1616_v28 }
 0x379   : > { %3068 = vpow2.f32 %v1643_v59  ;;  %1773 = vperm.xlu0 %3051, %v4104_v33   ;;  %v1657_v36 = vmul.f32 1.442695, %v1618_v51 }
 0x37a   : > { %3070 = vpow2.f32 %v1645_v1  ;;  %v1655_v32 = vmul.f32 1.442695, %v1617_v63 }
 0x37b   : > { %3072 = vpow2.f32 %v1647_v26 }
 0x37c   : > { %3074 = vpow2.f32 %v1649_v58 }
 0x37d   : > { %1779 = vperm.xlu0 %3051, %v4111_v11   ;;  %3076 = vpow2.f32 %v1651_v47 }
 0x37e   : > { %3078 = vpow2.f32 %v1653_v23 }
 0x37f   : > { %3080 = vpow2.f32 %v1655_v32 }
 0x380   : > { %3082 = vpow2.f32 %v1657_v36 }
 0x381   : > { %1785 = vperm.xlu0 %3051, %v4116_v7  }
 0x383   : > { %v4120_v46 = vpop.eup %3068 }
 0x384   : > { %v4122_v4 = vpop.eup %3070 }
 0x385   : > { %1743 = vperm.xlu1 %3050, %v4122_v4   ;;  %1740 = vperm.xlu0 %3051, %v4120_v46   ;;  %v4126_v41 = vpop.eup %3072 }
 0x386   : > { %v4128_v57 = vpop.eup %3074 }
 0x387   : > { %v4132_v44 = vpop.eup %3076 }
 0x388   : > { %v4134_v50 = vpop.eup %3078 }
 0x389   : > { %1746 = vperm.xlu1 %3050, %v4126_v41   ;;  %1749 = vperm.xlu0 %3051, %v4128_v57   ;;  %v4138_v34 = vpop.eup %3080 }
 0x38a   : > { %v4141_v43 = vpop.eup %3082 }
 0x38d   : > { %1752 = vperm.xlu1 %3050, %v4132_v44   ;;  %1755 = vperm.xlu0 %3051, %v4134_v50  }
 0x391   : > { %1758 = vperm.xlu1 %3050, %v4138_v34  }
 0x393   : > { %v1443_v35 = vpop.xlane.xlu0 %1442 }
 0x394   : > { %v1518_v12 = vrot.slane %v1443_v35, %v3473_v2  ;;  %v1530_v28 = vrot.slane %v1443_v35, %v3496_v17  ;;  %v1534_v14 = vrot.slane %v1443_v35, %v3484_v9  ;;  %v1522_v23 = vrot.slane %v1443_v35, %v3476_v3 }
 0x395   : > { %1761 = vperm.xlu1 %3050, %v4141_v43   ;;  %v1538_v32 = vrot.slane %v1443_v35, %v3507_v22 }
 0x396   : > { %v4144_v15 = vpop.xlane.xlu1 %1445  ;;  %v1627_v58 = vsub.f32 %v3953_v61, %v1518_v12  ;;  %v1630_v63 = vsub.f32 %v3961_v29, %v1530_v28  ;;  %v1631_v36 = vsub.f32 %v3965_v40, %v1534_v14 }
 0x397   : > { %v1550_v31 = vrot.slane %v4144_v15, %v3473_v2  ;;  %v1554_v54 = vrot.slane %v4144_v15, %v3476_v3  ;;  %v1558_v25 = vrot.slane %v4144_v15, %v3481_v8  ;;  %v1562_v55 = vrot.slane %v4144_v15, %v3496_v17 }
 0x398   : > { %v1566_v1 = vrot.slane %v4144_v15, %v3484_v9  ;;  %v1683_v40 = vmul.f32 1.442695, %v1631_v36 }
 0x399   : > { %v1635_v6 = vsub.f32 %v3937_v52, %v1550_v31  ;;  %v1636_v5 = vsub.f32 %v3932_v10, %v1554_v54  ;;  %v1637_v59 = vsub.f32 %v3945_v53, %v1558_v25  ;;  %v1638_v39 = vsub.f32 %v3940_v37, %v1562_v55 }
 0x39a   : > { %v1570_v10 = vrot.slane %v4144_v15, %v3507_v22  ;;  %v1639_v52 = vsub.f32 %v3948_v16, %v1566_v1  ;;  %v1675_v37 = vmul.f32 1.442695, %v1627_v58  ;;  %v1681_v16 = vmul.f32 1.442695, %v1630_v63 }
 0x39b   : > { %v1691_v26 = vmul.f32 1.442695, %v1635_v6  ;;  %v1693_v49 = vmul.f32 1.442695, %v1636_v5  ;;  %v1695_v47 = vmul.f32 1.442695, %v1637_v59  ;;  %v1526_v31 = vrot.slane %v1443_v35, %v3481_v8 }
 0x39c   : > { %v1697_v53 = vmul.f32 1.442695, %v1638_v39  ;;  %v1640_v51 = vsub.f32 %v3956_v30, %v1570_v10  ;;  %v1699_v61 = vmul.f32 1.442695, %v1639_v52  ;;  %v1628_v54 = vsub.f32 %v3972_v27, %v1522_v23 }
 0x39d   : > { %3084 = vpow2.f32 %v1691_v26  ;;  %v1542_v30 = vrot.slane %v1443_v35, %v3499_v18  ;;  %v1632_v6 = vsub.f32 %v3969_v21, %v1538_v32  ;;  %v1629_v5 = vsub.f32 %v3980_v60, %v1526_v31 }
 0x39e   : > { %3086 = vpow2.f32 %v1693_v49  ;;  %v1701_v29 = vmul.f32 1.442695, %v1640_v51  ;;  %v1677_v12 = vmul.f32 1.442695, %v1628_v54  ;;  %v1574_v27 = vrot.slane %v4144_v15, %v3499_v18 }
 0x39f   : > { %3088 = vpow2.f32 %v1695_v47  ;;  %v1546_v39 = vrot.slane %v1443_v35, %v3512_v24  ;;  %v1633_v21 = vsub.f32 %v3977_v62, %v1542_v30  ;;  %v1685_v26 = vmul.f32 1.442695, %v1632_v6 }
 0x3a0   : > { %3090 = vpow2.f32 %v1697_v53  ;;  %v1679_v60 = vmul.f32 1.442695, %v1629_v5  ;;  %v1578_v49 = vrot.slane %v4144_v15, %v3512_v24  ;;  %v1641_v28 = vsub.f32 %v3985_v13, %v1574_v27 }
 0x3a1   : > { %3092 = vpow2.f32 %v1675_v37  ;;  %v1634_v35 = vsub.f32 %v3988_v42, %v1546_v39  ;;  %v1687_v62 = vmul.f32 1.442695, %v1633_v21 }
 0x3a2   : > { %3094 = vpow2.f32 %v1699_v61  ;;  %v1642_v10 = vsub.f32 %v3993_v48, %v1578_v49  ;;  %v1703_v52 = vmul.f32 1.442695, %v1641_v28 }
 0x3a3   : > { %3096 = vpow2.f32 %v1681_v16  ;;  %v1689_v13 = vmul.f32 1.442695, %v1634_v35 }
 0x3a4   : > { %3098 = vpow2.f32 %v1701_v29  ;;  %v1705_v42 = vmul.f32 1.442695, %v1642_v10 }
 0x3a5   : > { %3100 = vpow2.f32 %v1683_v40 }
 0x3a6   : > { %3102 = vpow2.f32 %v1677_v12 }
 0x3a7   : > { %v4174_v25 = vpop.eup %3084  ;;  %3104 = vpow2.f32 %v1685_v26 }
 0x3a8   : > { %v4176_v55 = vpop.eup %3086  ;;  %1812 = vperm.xlu1 %3050, %v4174_v25   ;;  %3106 = vpow2.f32 %v1679_v60 }
 0x3a9   : > { %1815 = vperm.xlu0 %3051, %v4176_v55   ;;  %v4185_v59 = vpop.eup %3088  ;;  %3108 = vpow2.f32 %v1687_v62 }
 0x3aa   : > { %v4187_v1 = vpop.eup %3090  ;;  %3110 = vpow2.f32 %v1703_v52 }
 0x3ab   : > { %v4196_v58 = vpop.eup %3092  ;;  %3112 = vpow2.f32 %v1689_v13 }
 0x3ac   : > { %1818 = vperm.xlu1 %3050, %v4185_v59   ;;  %v4198_v47 = vpop.eup %3094  ;;  %3114 = vpow2.f32 %v1705_v42 }
 0x3ad   : > { %1821 = vperm.xlu0 %3051, %v4187_v1   ;;  %v4204_v53 = vpop.eup %3096 }
 0x3ae   : > { %v4206_v15 = vpop.eup %3098 }
 0x3af   : > { %v4210_v14 = vpop.eup %3100 }
 0x3b0   : > { %1788 = vperm.xlu1 %3050, %v4196_v58   ;;  %v4212_v63 = vpop.eup %3102 }
 0x3b1   : > { %1824 = vperm.xlu0 %3051, %v4198_v47   ;;  %v4216_v48 = vpop.eup %3104 }
 0x3b2   : > { %v4218_v37 = vpop.eup %3106 }
 0x3b3   : > { %v4222_v23 = vpop.eup %3108 }
 0x3b4   : > { %1797 = vperm.xlu1 %3050, %v4204_v53   ;;  %v4224_v51 = vpop.eup %3110 }
 0x3b5   : > { %1827 = vperm.xlu0 %3051, %v4206_v15   ;;  %v4228_v61 = vpop.eup %3112 }
 0x3b6   : > { %v4230_v32 = vpop.eup %3114 }
 0x3b8   : > { %1800 = vperm.xlu1 %3050, %v4210_v14  }
 0x3b9   : > { %1791 = vperm.xlu0 %3051, %v4212_v63  }
 0x3bc   : > { %1803 = vperm.xlu1 %3050, %v4216_v48  }
 0x3bd   : > { %1794 = vperm.xlu0 %3051, %v4218_v37  }
 0x3c0   : > { %1806 = vperm.xlu1 %3050, %v4222_v23  }
 0x3c1   : > { %1830 = vperm.xlu0 %3051, %v4224_v51  }
 0x3c4   : > { %1809 = vperm.xlu1 %3050, %v4228_v61  }
 0x3c5   : > { %1833 = vperm.xlu0 %3051, %v4230_v32  }
 0x3ef   : > { %v1765_v16 = vpop.permute.xlu1 %1764 }
 0x3f0   : > { %v1768_v36 = vpop.permute.xlu0 %1767  ;;  %v1870_v29 = vrot.slane %v1765_v16, %v3998_v56 }
 0x3f1   : > { %v1874_v54 = vrot.slane %v1768_v36, %v3998_v56 }
 0x3f3   : > { %v1777_v6 = vpop.permute.xlu1 %1776  ;;  %v1970_v5 = vsel %vm1395_vm1, %v1874_v54, %v1870_v29 }
 0x3f4   : > { %v1771_v31 = vpop.permute.xlu0 %1770  ;;  %v1886_v21 = vrot.slane %v1777_v6, %v3998_v56 }
 0x3f5   : > { %v1878_v30 = vrot.slane %v1771_v31, %v3998_v56 }
 0x3f7   : > { %v1971_v27 = vsel %vm1397_vm6, %v1878_v30, %v1970_v5  ;;  %v1783_v60 = vpop.permute.xlu1 %1782 }
 0x3f8   : > { %v1774_v40 = vpop.permute.xlu0 %1773  ;;  %v1894_v62 = vrot.slane %v1783_v60, %v3998_v56 }
 0x3f9   : > { %v1882_v12 = vrot.slane %v1774_v40, %v3998_v56 }
 0x3fb   : > { %v1972_v39 = vsel %vm1399_vm7, %v1882_v12, %v1971_v27 }
 0x3fc   : > { %v1780_v26 = vpop.permute.xlu0 %1779  ;;  %v1973_v28 = vsel %vm1401_vm8, %v1886_v21, %v1972_v39 }
 0x3fd   : > { %v1890_v49 = vrot.slane %v1780_v26, %v3998_v56 }
 0x3ff   : > { %v1974_v35 = vsel %vm1403_vm9, %v1890_v49, %v1973_v28 }
 0x400   : > { %v1786_v10 = vpop.permute.xlu0 %1785  ;;  %v1975_v13 = vsel %vm1405_vm10, %v1894_v62, %v1974_v35 }
 0x401   : > { %v1898_v52 = vrot.slane %v1786_v10, %v3998_v56 }
 0x403   : > { %v1976_v42 = vsel %vm1407_vm11, %v1898_v52, %v1975_v13 }
 0x404   : > { %v1741_v36 = vpop.permute.xlu0 %1740  ;;  %v1744_v16 = vpop.permute.xlu1 %1743  ;;  %v1998_v31 = vsel %vm1434_vm12, %v1976_v42, 0.0 }
 0x405   : > { %1999 = vadd.xlane.f32.xlu0 %v1998_v31  ;;  %v1838_v30 = vrot.slane %v1741_v36, %v3998_v56  ;;  %v1842_v6 = vrot.slane %v1744_v16, %v3998_v56 }
 0x407   : > { %v1963_v12 = vsel %vm1395_vm1, %v1842_v6, %v1838_v30 }
 0x408   : > { %v1750_v54 = vpop.permute.xlu0 %1749  ;;  %v1747_v29 = vpop.permute.xlu1 %1746 }
 0x409   : > { %v1846_v40 = vrot.slane %v1747_v29, %v3998_v56  ;;  %v1850_v27 = vrot.slane %v1750_v54, %v3998_v56 }
 0x40b   : > { %v1964_v39 = vsel %vm1397_vm6, %v1846_v40, %v1963_v12 }
 0x40c   : > { %v1753_v5 = vpop.permute.xlu1 %1752  ;;  %v1756_v21 = vpop.permute.xlu0 %1755  ;;  %v1965_v28 = vsel %vm1399_vm7, %v1850_v27, %v1964_v39 }
 0x40d   : > { %v1854_v26 = vrot.slane %v1753_v5, %v3998_v56  ;;  %v1858_v49 = vrot.slane %v1756_v21, %v3998_v56 }
 0x40f   : > { %v1966_v35 = vsel %vm1401_vm8, %v1854_v26, %v1965_v28 }
 0x410   : > { %v1759_v60 = vpop.permute.xlu1 %1758  ;;  %v1967_v13 = vsel %vm1403_vm9, %v1858_v49, %v1966_v35 }
 0x411   : > { %v1862_v62 = vrot.slane %v1759_v60, %v3998_v56 }
 0x413   : > { %v1968_v42 = vsel %vm1405_vm10, %v1862_v62, %v1967_v13 }
 0x414   : > { %v1762_v10 = vpop.permute.xlu1 %1761 }
 0x415   : > { %v1866_v52 = vrot.slane %v1762_v10, %v3998_v56 }
 0x417   : > { %v1969_v36 = vsel %vm1407_vm11, %v1866_v52, %v1968_v42 }
 0x418   : > { %v1995_v16 = vsel %vm1434_vm12, %v1969_v36, 0.0 }
 0x419   : > { %1996 = vadd.xlane.f32.xlu1 %v1995_v16 }
 0x427   : > { %v1813_v31 = vpop.permute.xlu1 %1812 }
 0x428   : > { %v1816_v54 = vpop.permute.xlu0 %1815  ;;  %v1934_v60 = vrot.slane %v1813_v31, %v3998_v56 }
 0x429   : > { %v1938_v26 = vrot.slane %v1816_v54, %v3998_v56 }
 0x42b   : > { %v1819_v29 = vpop.permute.xlu1 %1818  ;;  %v1984_v42 = vsel %vm1395_vm1, %v1938_v26, %v1934_v60 }
 0x42c   : > { %v1822_v30 = vpop.permute.xlu0 %1821  ;;  %v1942_v28 = vrot.slane %v1819_v29, %v3998_v56 }
 0x42d   : > { %v1946_v36 = vrot.slane %v1822_v30, %v3998_v56 }
 0x42e   : > { %v1985_v29 = vsel %vm1397_vm6, %v1942_v28, %v1984_v42 }
 0x42f   : > { %v1789_v6 = vpop.permute.xlu1 %1788 }
 0x430   : > { %v1825_v40 = vpop.permute.xlu0 %1824  ;;  %v1902_v35 = vrot.slane %v1789_v6, %v3998_v56 }
 0x431   : > { %v1950_v6 = vrot.slane %v1825_v40, %v3998_v56 }
 0x433   : > { %v1798_v5 = vpop.permute.xlu1 %1797 }
 0x434   : > { %v1828_v12 = vpop.permute.xlu0 %1827  ;;  %v1914_v52 = vrot.slane %v1798_v5, %v3998_v56 }
 0x437   : > { %v1801_v27 = vpop.permute.xlu1 %1800 }
 0x438   : > { %v1792_v39 = vpop.permute.xlu0 %1791  ;;  %v1918_v16 = vrot.slane %v1801_v27, %v3998_v56 }
 0x439   : > { %v1906_v21 = vrot.slane %v1792_v39, %v3998_v56 }
 0x43b   : > { %v1804_v49 = vpop.permute.xlu1 %1803  ;;  %v1977_v13 = vsel %vm1395_vm1, %v1906_v21, %v1902_v35  ;;  %v1954_v21 = vrot.slane %v1828_v12, %v3998_v56  ;;  %v1986_v35 = vsel %vm1399_vm7, %v1946_v36, %v1985_v29 }
 0x43c   : > { %v1795_v62 = vpop.permute.xlu0 %1794  ;;  %v1987_v40 = vsel %vm1401_vm8, %v1950_v6, %v1986_v35 }
 0x43d   : > { %v1910_v10 = vrot.slane %v1795_v62, %v3998_v56  ;;  %v1922_v62 = vrot.slane %v1804_v49, %v3998_v56  ;;  %v1988_v49 = vsel %vm1403_vm9, %v1954_v21, %v1987_v40 }
 0x43f   : > { %v1978_v31 = vsel %vm1397_vm6, %v1910_v10, %v1977_v13  ;;  %v1807_v54 = vpop.permute.xlu1 %1806 }
 0x440   : > { %v1979_v39 = vsel %vm1399_vm7, %v1914_v52, %v1978_v31  ;;  %v1831_v5 = vpop.permute.xlu0 %1830  ;;  %v1926_v30 = vrot.slane %v1807_v54, %v3998_v56 }
 0x441   : > { %v1980_v26 = vsel %vm1401_vm8, %v1918_v16, %v1979_v39  ;;  %v1958_v60 = vrot.slane %v1831_v5, %v3998_v56 }
 0x442   : > { %v1981_v27 = vsel %vm1403_vm9, %v1922_v62, %v1980_v26 }
 0x443   : > { %v1810_v28 = vpop.permute.xlu1 %1809  ;;  %v1982_v13 = vsel %vm1405_vm10, %v1926_v30, %v1981_v27  ;;  %v1989_v42 = vsel %vm1405_vm10, %v1958_v60, %v1988_v49 }
 0x444   : > { %v1834_v10 = vpop.permute.xlu0 %1833  ;;  %v1930_v52 = vrot.slane %v1810_v28, %v3998_v56 }
 0x445   : > { %v1962_v12 = vrot.slane %v1834_v10, %v3998_v56 }
 0x446   : > { %v1983_v16 = vsel %vm1407_vm11, %v1930_v52, %v1982_v13 }
 0x447   : > { %v1990_v31 = vsel %vm1407_vm11, %v1962_v12, %v1989_v42  ;;  %v2001_v36 = vsel %vm1434_vm12, %v1983_v16, 0.0 }
 0x448   : > { %v2004_v54 = vsel %vm1434_vm12, %v1990_v31, 0.0  ;;  %2002 = vadd.xlane.f32.xlu0 %v2001_v36 }
 0x449   : > { %2005 = vadd.xlane.f32.xlu1 %v2004_v54 }
 0x492   : > { %v2000_v29 = vpop.xlane.xlu0 %1999 }
 0x493   : > { %3116 = vrcp.f32 %v2000_v29 }
 0x49d   : > { %v3117_v6 = vpop.eup %3116 }
 0x49e   : > { %v2050_v39 = vrot.slane %v3117_v6, %v3473_v2  ;;  %v2054_v62 = vrot.slane %v3117_v6, %v3476_v3  ;;  %v2066_v26 = vrot.slane %v3117_v6, %v3484_v9  ;;  %v2058_v30 = vrot.slane %v3117_v6, %v3481_v8 }
 0x49f   : > { %v2074_v35 = vrot.slane %v3117_v6, %v3499_v18  ;;  %v2062_v28 = vrot.slane %v3117_v6, %v3496_v17  ;;  %v2070_v10 = vrot.slane %v3117_v6, %v3507_v22 }
 0x4a0   : > { %v2183_v5 = vmul.f32 %v4080_v38, %v2050_v39  ;;  %v2184_v21 = vmul.f32 %v4082_v0, %v2054_v62  ;;  %v2187_v27 = vmul.f32 %v4086_v45, %v2066_v26  ;;  %v2185_v60 = vmul.f32 %v4092_v19, %v2058_v30 }
 0x4a1   : > { %v2189_v38 = vmul.f32 %v4102_v20, %v2074_v35  ;;  %v2186_v0 = vmul.f32 %v4104_v33, %v2062_v28  ;;  %v2188_v45 = vmul.f32 %v4111_v11, %v2070_v10  ;;  %v2078_v19 = vrot.slane %v3117_v6, %v3512_v24 }
 0x4a2   : > { %2359 = vperm.xlu1 %3050, %v2183_v5   ;;  %2362 = vperm.xlu0 %3051, %v2184_v21   ;;  %v3281_v6 = vmov 0.0  }
 0x4a3   : > { %v2190_v52 = vmul.f32 %v4116_v7, %v2078_v19  ;;  %2960 = vmatprep.subr.mxu1 %v3281_v6  ;;  %2962 = vmatprep.mubr.msk.f32.mxu1 %vm3282_vm13, %v3281_v6 }
 0x4a4   : > { %2975 = vmatprep.subr.mxu0 %v3281_v6  ;;  %2977 = vmatprep.mubr.msk.f32.mxu0 %vm3282_vm13, %v3281_v6 }
 0x4a6   : > { %2371 = vperm.xlu1 %3050, %v2187_v27   ;;  %2365 = vperm.xlu0 %3051, %v2185_v60   ;;  %v1997_v40 = vpop.xlane.xlu1 %1996 }
 0x4a7   : > { %3118 = vrcp.f32 %v1997_v40 }
 0x4aa   : > { %2377 = vperm.xlu1 %3050, %v2189_v38   ;;  %2368 = vperm.xlu0 %3051, %v2186_v0  }
 0x4ae   : > { %2374 = vperm.xlu0 %3051, %v2188_v45  }
 0x4b1   : > { %v3119_v49 = vpop.eup %3118 }
 0x4b2   : > { %2380 = vperm.xlu0 %3051, %v2190_v52   ;;  %v2022_v12 = vrot.slane %v3119_v49, %v3476_v3  ;;  %v2018_v13 = vrot.slane %v3119_v49, %v3473_v2  ;;  %v2026_v42 = vrot.slane %v3119_v49, %v3481_v8  ;;  %v2030_v16 = vrot.slane %v3119_v49, %v3496_v17 }
 0x4b3   : > { %v2034_v31 = vrot.slane %v3119_v49, %v3484_v9  ;;  %v2038_v36 = vrot.slane %v3119_v49, %v3507_v22  ;;  %v2042_v54 = vrot.slane %v3119_v49, %v3499_v18 }
 0x4b4   : > { %v2176_v20 = vmul.f32 %v4122_v4, %v2022_v12  ;;  %v2175_v33 = vmul.f32 %v4120_v46, %v2018_v13  ;;  %v2177_v11 = vmul.f32 %v4126_v41, %v2026_v42  ;;  %v2178_v7 = vmul.f32 %v4128_v57, %v2030_v16 }
 0x4b5   : > { %v2179_v4 = vmul.f32 %v4132_v44, %v2034_v31  ;;  %v2180_v46 = vmul.f32 %v4134_v50, %v2038_v36  ;;  %v2181_v41 = vmul.f32 %v4138_v34, %v2042_v54  ;;  %v2046_v57 = vrot.slane %v3119_v49, %v3512_v24  ;;  %v3140_v44 = vld [vmem:[%s3459_s7] sm:$0xff]  ;;  %v3141_v50 = vld [vmem:[%s3459_s7 + $0x18] sm:$0xff] }
 0x4b6   : > { %2219 = vperm.xlu1 %3050, %v2176_v20   ;;  %2216 = vperm.xlu0 %3051, %v2175_v33  }
 0x4b7   : > { %v2182_v29 = vmul.f32 %v4141_v43, %v2046_v57  ;;  %2961 = vmatpush3.msra.mxu1 %v3140_v44  ;;  %2976 = vmatpush3.msra.mxu0 %v3141_v50 }
 0x4b8   : > { %2965 = vmatprep.subr.mxu1 %v3281_v6 }
 0x4ba   : > { %2222 = vperm.xlu1 %3050, %v2177_v11   ;;  %2225 = vperm.xlu0 %3051, %v2178_v7  }
 0x4be   : > { %2228 = vperm.xlu1 %3050, %v2179_v4   ;;  %2231 = vperm.xlu0 %3051, %v2180_v46  }
 0x4c2   : > { %2234 = vperm.xlu1 %3050, %v2181_v41  }
 0x4c6   : > { %2237 = vperm.xlu1 %3050, %v2182_v29  }
 0x4d5   : > { %v2003_v43 = vpop.xlane.xlu0 %2002 }
 0x4d6   : > { %v2006_v34 = vpop.xlane.xlu1 %2005 }
 0x4d7   : > { %3120 = vrcp.f32 %v2006_v34 }
 0x4d8   : > { %3122 = vrcp.f32 %v2003_v43 }
 0x4e1   : > { %v3121_v39 = vpop.eup %3120 }
 0x4e2   : > { %v2118_v62 = vrot.slane %v3121_v39, %v3476_v3  ;;  %v2114_v5 = vrot.slane %v3121_v39, %v3473_v2  ;;  %v2126_v30 = vrot.slane %v3121_v39, %v3496_v17  ;;  %v2122_v27 = vrot.slane %v3121_v39, %v3481_v8  ;;  %v3123_v60 = vpop.eup %3122 }
 0x4e3   : > { %v2130_v40 = vrot.slane %v3121_v39, %v3484_v9  ;;  %v2082_v38 = vrot.slane %v3123_v60, %v3473_v2  ;;  %v2134_v0 = vrot.slane %v3121_v39, %v3507_v22  ;;  %v2094_v10 = vrot.slane %v3123_v60, %v3496_v17 }
 0x4e4   : > { %v2200_v21 = vmul.f32 %v4176_v55, %v2118_v62  ;;  %v2199_v26 = vmul.f32 %v4174_v25, %v2114_v5  ;;  %v2202_v35 = vmul.f32 %v4187_v1, %v2126_v30  ;;  %v2201_v28 = vmul.f32 %v4185_v59, %v2122_v27 }
 0x4e5   : > { %v2203_v55 = vmul.f32 %v4198_v47, %v2130_v40  ;;  %v2191_v25 = vmul.f32 %v4196_v58, %v2082_v38  ;;  %v2204_v1 = vmul.f32 %v4206_v15, %v2134_v0  ;;  %v2194_v59 = vmul.f32 %v4204_v53, %v2094_v10 }
 0x4e6   : > { %2648 = vperm.xlu0 %3051, %v2200_v21   ;;  %2645 = vperm.xlu1 %3050, %v2199_v26   ;;  %v2086_v45 = vrot.slane %v3123_v60, %v3476_v3  ;;  %v2098_v2 = vrot.slane %v3123_v60, %v3484_v9  ;;  %v2090_v19 = vrot.slane %v3123_v60, %v3481_v8 }
 0x4e7   : > { %v2102_v17 = vrot.slane %v3123_v60, %v3507_v22  ;;  %v2138_v3 = vrot.slane %v3121_v39, %v3499_v18  ;;  %v2106_v9 = vrot.slane %v3123_v60, %v3499_v18  ;;  %v2142_v8 = vrot.slane %v3121_v39, %v3512_v24 }
 0x4e8   : > { %v2192_v47 = vmul.f32 %v4212_v63, %v2086_v45  ;;  %v2195_v58 = vmul.f32 %v4210_v14, %v2098_v2  ;;  %v2193_v15 = vmul.f32 %v4218_v37, %v2090_v19  ;;  %v2110_v22 = vrot.slane %v3123_v60, %v3512_v24  ;;  %v3143_v2 = vld [vmem:[%s3459_s7 + $0x10] sm:$0xff] }
 0x4e9   : > { %v2196_v53 = vmul.f32 %v4216_v48, %v2102_v17  ;;  %v2205_v63 = vmul.f32 %v4224_v51, %v2138_v3  ;;  %v2197_v14 = vmul.f32 %v4222_v23, %v2106_v9  ;;  %v2206_v37 = vmul.f32 %v4230_v32, %v2142_v8 }
 0x4ea   : > { %2654 = vperm.xlu0 %3051, %v2202_v35   ;;  %2651 = vperm.xlu1 %3050, %v2201_v28   ;;  %v2198_v48 = vmul.f32 %v4228_v61, %v2110_v22 }
 0x4ee   : > { %2657 = vperm.xlu0 %3051, %v2203_v55   ;;  %2502 = vperm.xlu1 %3050, %v2191_v25  }
 0x4f2   : > { %2660 = vperm.xlu0 %3051, %v2204_v1   ;;  %2511 = vperm.xlu1 %3050, %v2194_v59   ;;  %v3142_v1 = vld [vmem:[%s3459_s7 + $0x8] sm:$0xff]  ;;  %s3202_s7 = scalar_lea.vmem %s4452_s28, 512 }
 0x4f3   : > { %p3203_p4 = scmp.ne.s32.totalorder %s4452_s28, %s3202_s7  ;;  %p3210_p13 = scmp.lt.s32.totalorder %s3208_s26, %s3202_s7 }
 0x4f5   : > { %p3204_p6 = pnand %p3203_p4, %p3402_p12  ;;  %p3211_p3 = por %p3210_p13, %p3209_p11 }
 0x4f6   : > { %2505 = vperm.xlu0 %3051, %v2192_v47   ;;  %2514 = vperm.xlu1 %3050, %v2195_v58  }
 0x4f7   : > { %p3205_p8 = pneg %p3204_p6 }
 0x4f9   : > { %p3212_p7 = pnand %p3211_p3, %p3205_p8 }
 0x4fa   : > { %2508 = vperm.xlu0 %3051, %v2193_v15   ;;  %2517 = vperm.xlu1 %3050, %v2196_v53  }
 0x4fe   : > { %2663 = vperm.xlu0 %3051, %v2205_v63   ;;  %2520 = vperm.xlu1 %3050, %v2197_v14  }
 0x502   : > { %2666 = vperm.xlu0 %3051, %v2206_v37   ;;  %2523 = vperm.xlu1 %3050, %v2198_v48  }
 0x521   : > { %v2363_v52 = vpop.permute.xlu0 %2362  ;;  %v2360_v18 = vpop.permute.xlu1 %2359 }
 0x522   : > { %v2389_v31 = vrot.slane %v2363_v52, %v3998_v56  ;;  %v2385_v36 = vrot.slane %v2360_v18, %v3998_v56 }
 0x524   : > { %v2414_v34 = vsel %vm1395_vm1, %v2389_v31, %v2385_v36 }
 0x525   : > { %v2366_v49 = vpop.permute.xlu0 %2365  ;;  %v2372_v13 = vpop.permute.xlu1 %2371 }
 0x526   : > { %v2393_v54 = vrot.slane %v2366_v49, %v3998_v56  ;;  %v2401_v27 = vrot.slane %v2372_v13, %v3998_v56 }
 0x528   : > { %v2415_v62 = vsel %vm1397_vm6, %v2393_v54, %v2414_v34 }
 0x529   : > { %v2369_v12 = vpop.permute.xlu0 %2368  ;;  %v2378_v20 = vpop.permute.xlu1 %2377 }
 0x52a   : > { %v2397_v44 = vrot.slane %v2369_v12, %v3998_v56  ;;  %v2409_v10 = vrot.slane %v2378_v20, %v3998_v56 }
 0x52c   : > { %v2416_v26 = vsel %vm1399_vm7, %v2397_v44, %v2415_v62 }
 0x52d   : > { %v2375_v51 = vpop.permute.xlu0 %2374  ;;  %v2417_v40 = vsel %vm1401_vm8, %v2401_v27, %v2416_v26 }
 0x52e   : > { %v2405_v30 = vrot.slane %v2375_v51, %v3998_v56 }
 0x530   : > { %v2418_v55 = vsel %vm1403_vm9, %v2405_v30, %v2417_v40 }
 0x531   : > { %v2381_v23 = vpop.permute.xlu0 %2380  ;;  %v2419_v59 = vsel %vm1405_vm10, %v2409_v10, %v2418_v55 }
 0x532   : > { %v2413_v25 = vrot.slane %v2381_v23, %v3998_v56 }
 0x534   : > { %v2420_v45 = vsel %vm1407_vm11, %v2413_v25, %v2419_v59 }
 0x535   : > { %v2217_v33 = vpop.permute.xlu0 %2216  ;;  %v2220_v42 = vpop.permute.xlu1 %2219 }
 0x536   : > { %v2242_v11 = vrot.slane %v2217_v33, %v3998_v56  ;;  %v2246_v32 = vrot.slane %v2220_v42, %v3998_v56 }
 0x538   : > { %v2271_v4 = vsel %vm1395_vm1, %v2246_v32, %v2242_v11 }
 0x539   : > { %v2226_v16 = vpop.permute.xlu0 %2225  ;;  %v2223_v24 = vpop.permute.xlu1 %2222 }
 0x53a   : > { %v2250_v61 = vrot.slane %v2223_v24, %v3998_v56  ;;  %v2254_v46 = vrot.slane %v2226_v16, %v3998_v56 }
 0x53c   : > { %v2272_v41 = vsel %vm1397_vm6, %v2250_v61, %v2271_v4 }
 0x53d   : > { %v2229_v7 = vpop.permute.xlu1 %2228  ;;  %v2232_v57 = vpop.permute.xlu0 %2231  ;;  %v2273_v39 = vsel %vm1399_vm7, %v2254_v46, %v2272_v41 }
 0x53e   : > { %v2258_v29 = vrot.slane %v2229_v7, %v3998_v56  ;;  %v2262_v43 = vrot.slane %v2232_v57, %v3998_v56 }
 0x540   : > { %v2274_v5 = vsel %vm1401_vm8, %v2258_v29, %v2273_v39 }
 0x541   : > { %v2235_v50 = vpop.permute.xlu1 %2234  ;;  %v2275_v35 = vsel %vm1403_vm9, %v2262_v43, %v2274_v5 }
 0x542   : > { %v2266_v21 = vrot.slane %v2235_v50, %v3998_v56 }
 0x544   : > { %v2276_v38 = vsel %vm1405_vm10, %v2266_v21, %v2275_v35 }
 0x545   : > { %v2238_v60 = vpop.permute.xlu1 %2237 }
 0x546   : > { %v2270_v28 = vrot.slane %v2238_v60, %v3998_v56 }
 0x548   : > { %v2277_v0 = vsel %vm1407_vm11, %v2270_v28, %v2276_v38 }
 0x549   : > { %2963 = vmatmul.mubr.msk.f32.vlgmr.msra.gmra.mrb[0].mxu1 %vm1434_vm12, %v2277_v0 }
 0x54a   : > { %2966 = vmatpush3.msra.mxu1 %v3142_v1  ;;  %2967 = vmatprep.mubr.msk.f32.mxu1 %vm3282_vm13, %v3281_v6 }
 0x54b   : > { %2970 = vmatprep.subr.mxu1 %v3281_v6 }
 0x54d   : > { %2968 = vmatmul.mubr.msk.f32.vlgmr.msra.gmra.mrb[2].mxu1 %vm1434_vm12, %v2420_v45 }
 0x54e   : > { %2971 = vmatpush3.msra.mxu1 %v3143_v2  ;;  %2972 = vmatprep.mubr.msk.f32.mxu1 %vm3282_vm13, %v3281_v6 }
 0x565   : > { %v2649_v47 = vpop.permute.xlu0 %2648  ;;  %v2646_v58 = vpop.permute.xlu1 %2645 }
 0x566   : > { %v2675_v22 = vrot.slane %v2649_v47, %v3998_v56  ;;  %v2671_v37 = vrot.slane %v2646_v58, %v3998_v56 }
 0x568   : > { %v2700_v51 = vsel %vm1395_vm1, %v2675_v22, %v2671_v37 }
 0x569   : > { %v2655_v19 = vpop.permute.xlu0 %2654  ;;  %v2652_v17 = vpop.permute.xlu1 %2651 }
 0x56a   : > { %v2679_v48 = vrot.slane %v2652_v17, %v3998_v56  ;;  %v2683_v20 = vrot.slane %v2655_v19, %v3998_v56 }
 0x56c   : > { %v2701_v42 = vsel %vm1397_vm6, %v2679_v48, %v2700_v51 }
 0x56d   : > { %v2658_v15 = vpop.permute.xlu0 %2657  ;;  %v2503_v53 = vpop.permute.xlu1 %2502  ;;  %v2702_v46 = vsel %vm1399_vm7, %v2683_v20, %v2701_v42 }
 0x56e   : > { %v2528_v6 = vrot.slane %v2503_v53, %v3998_v56  ;;  %v2687_v16 = vrot.slane %v2658_v15, %v3998_v56 }
 0x570   : > { %v2703_v41 = vsel %vm1401_vm8, %v2687_v16, %v2702_v46 }
 0x571   : > { %v2661_v3 = vpop.permute.xlu0 %2660  ;;  %v2512_v9 = vpop.permute.xlu1 %2511 }
 0x572   : > { %v2540_v12 = vrot.slane %v2512_v9, %v3998_v56  ;;  %v2691_v61 = vrot.slane %v2661_v3, %v3998_v56 }
 0x574   : > { %v2704_v44 = vsel %vm1403_vm9, %v2691_v61, %v2703_v41 }
 0x575   : > { %v2506_v63 = vpop.permute.xlu0 %2505  ;;  %v2515_v14 = vpop.permute.xlu1 %2514 }
 0x576   : > { %v2532_v8 = vrot.slane %v2506_v63, %v3998_v56  ;;  %v2544_v23 = vrot.slane %v2515_v14, %v3998_v56 }
 0x578   : > { %v2557_v13 = vsel %vm1395_vm1, %v2532_v8, %v2528_v6 }
 0x579   : > { %v2509_v52 = vpop.permute.xlu0 %2508  ;;  %v2518_v18 = vpop.permute.xlu1 %2517 }
 0x57a   : > { %v2536_v49 = vrot.slane %v2509_v52, %v3998_v56  ;;  %v2548_v31 = vrot.slane %v2518_v18, %v3998_v56 }
 0x57c   : > { %v2558_v33 = vsel %vm1397_vm6, %v2536_v49, %v2557_v13 }
 0x57d   : > { %v2559_v24 = vsel %vm1399_vm7, %v2540_v12, %v2558_v33  ;;  %v2664_v11 = vpop.permute.xlu0 %2663  ;;  %v2521_v32 = vpop.permute.xlu1 %2520 }
 0x57e   : > { %v2560_v7 = vsel %vm1401_vm8, %v2544_v23, %v2559_v24  ;;  %v2695_v36 = vrot.slane %v2664_v11, %v3998_v56  ;;  %v2552_v4 = vrot.slane %v2521_v32, %v3998_v56 }
 0x57f   : > { %v2561_v54 = vsel %vm1403_vm9, %v2548_v31, %v2560_v7 }
 0x580   : > { %v2705_v43 = vsel %vm1405_vm10, %v2695_v36, %v2704_v44  ;;  %v2562_v39 = vsel %vm1405_vm10, %v2552_v4, %v2561_v54 }
 0x581   : > { %v2667_v57 = vpop.permute.xlu0 %2666  ;;  %v2524_v29 = vpop.permute.xlu1 %2523 }
 0x582   : > { %v2699_v50 = vrot.slane %v2667_v57, %v3998_v56  ;;  %v2556_v34 = vrot.slane %v2524_v29, %v3998_v56 }
 0x584   : > { %v2706_v62 = vsel %vm1407_vm11, %v2699_v50, %v2705_v43  ;;  %v2563_v5 = vsel %vm1407_vm11, %v2556_v34, %v2562_v39 }
 0x585   : > { %2973 = vmatmul.mubr.msk.f32.vlgmr.msra.gmra.mrb[4].mxu1 %vm1434_vm12, %v2563_v5  ;;  %2978 = vmatmul.mubr.msk.f32.vlgmr.msra.gmra.mrb[4].mxu0 %vm1434_vm12, %v2706_v62 }
 0x61c   : > { %v2346_v21 = vpop.f32.mrb[0].mxu1 }
 0x61d   : > { %v2925_v26 = vmul.f32 -1.442695, %v2346_v21  ;;  %v2964_v30 = vpop.f32.mrb[1].mxu1 }
 0x61f   : > { %3124 = vpow2.f32 %v2925_v26 }
 0x620   : > { %v2489_v27 = vpop.f32.mrb[2].mxu1 }
 0x621   : > { %v2926_v60 = vmul.f32 -1.442695, %v2489_v27  ;;  %v2969_v56 = vpop.f32.mrb[3].mxu1 }
 0x623   : > { %3126 = vpow2.f32 %v2926_v60 }
 0x629   : > { %v3125_v35 = vpop.eup %3124 }
 0x62a   : > { %v2791_v28 = vadd.f32 1.0, %v3125_v35 }
 0x62c   : > { %3128 = vrcp.f32 %v2791_v28 }
 0x62d   : > { %v3127_v40 = vpop.eup %3126 }
 0x62e   : > { %v2792_v38 = vadd.f32 1.0, %v3127_v40 }
 0x630   : > { %3130 = vrcp.f32 %v2792_v38 }
 0x636   : > { %v3129_v55 = vpop.eup %3128 }
 0x637   : > { %2803 = vst.msk [vmem:[%s257_s13] sm:$0xff] %vm266_vm0, %v3129_v55 }
 0x63a   : > { %v3131_v25 = vpop.eup %3130 }
 0x63b   : > { %2804 = vst.msk [vmem:[%s257_s13 + $0x8] sm:$0xff] %vm266_vm0, %v3131_v25 }
 0x658   : > { %v2632_v0 = vpop.f32.mrb[4].mxu1  ;;  %v2775_v10 = vpop.f32.mrb[4].mxu0 }
 0x659   : > { %v2927_v1 = vmul.f32 -1.442695, %v2632_v0  ;;  %v2928_v59 = vmul.f32 -1.442695, %v2775_v10  ;;  %v2974_v45 = vpop.f32.mrb[5].mxu1  ;;  %v2979_v2 = vpop.f32.mrb[5].mxu0 }
 0x65b   : > { %3132 = vpow2.f32 %v2927_v1 }
 0x65c   : > { %3134 = vpow2.f32 %v2928_v59 }
 0x665   : > { %v3133_v47 = vpop.eup %3132 }
 0x666   : > { %v3135_v58 = vpop.eup %3134  ;;  %v2793_v19 = vadd.f32 1.0, %v3133_v47 }
 0x667   : > { %v2794_v17 = vadd.f32 1.0, %v3135_v58 }
 0x668   : > { %3136 = vrcp.f32 %v2793_v19 }
 0x669   : > { %3138 = vrcp.f32 %v2794_v17 }
 0x672   : > { %v3137_v15 = vpop.eup %3136 }
 0x673   : > { %v3139_v53 = vpop.eup %3138  ;;  %2805 = vst.msk [vmem:[%s257_s13 + $0x10] sm:$0xff] %vm266_vm0, %v3137_v15 }
 0x674   : > { %2806 = vst.msk [vmem:[%s257_s13 + $0x18] sm:$0xff] %vm266_vm0, %v3139_v53 }
 0x675   : > { %3215 = shalt.err (!%p3212_p7)
}
 0x676   : > { %s3216_s16 = scalar_lea.hbm %s4450_s11, 512  ;;  %s3220_s6 = scalar_lea.hbm %s4502_s5, 1536 }
 0x677   : > { %p3217_p9 = scmp.ne.s32.totalorder %s4450_s11, %s3216_s16  ;;  %p3221_p5 = scmp.lt.u32.totalorder %s4450_s11, %s4502_s5 }
 0x678   : > { %p3222_p10 = scmp.lt.u32.totalorder %s3220_s6, %s3216_s16  ;;  %p3224_p4 = scmp.lt.u32.totalorder %s3216_s16, %s4450_s11 }
 0x679   : > { %p3218_p1 = pnand %p3217_p9, %p3402_p12 }
 0x67a   : > { %p3223_p2 = por %p3222_p10, %p3221_p5 }
 0x67b   : > { %p3219_p0 = pneg %p3218_p1 }
 0x67c   : > { %p3225_p6 = por %p3224_p4, %p3223_p2 }
 0x67e   : > { %p3226_p8 = pnand %p3225_p6, %p3219_p0 }
 0x680   : > { %3229 = shalt.err (!%p3226_p8)
}
 0x681   : > { %s3284_s29 = smov 128   ;;  %s3285_s27 = smov 8  }
 0x682   : > { %2990 = dma.vmem_to_hbm [thread:$0]  (%p3402_p12), %s4452_s28, 512, %s4450_s11, %s2808_s12, %s3284_s29, %s3284_s29, %s3285_s27  }
 0x683 PF: > { %p3007_p11 = scmp.ge.s32.totalorder %s3272_s21, 2  ;;  %s2836_s10 = sand.u32 1, %s3260_s18  }
 0x684   : > { %p4526_p13 = scmp.ne.s32.totalorder %s4508_s25, 0  ;;  %s2837_s7 = scalar_lea.sflag [#allocation4], %s2836_s10 }
 0x686   : > { %p3001_p3 = pnand %p3007_p11, %p4526_p13 }
 0x688   : > { %3255 = dma.done.wait (!%p3001_p3), %s2837_s7, 512  }
 0x689   : > { %3257 = vsyncadd (!%p3001_p3), %s2837_s7, 4294966784  ;;  %p19_p7 = scmp.ge.s32.totalorder %s3369_s30, 5   ;;  %s4527_s18 = smov %s3264_s19 }
 0x68a   : > { %s4528_s19 = smov %s3268_s20  ;;  %s4529_s20 = smov %s3398_s8 }
 0x68b   : > { %s4530_s21 = smov %s3369_s30  ;;  %21 = sbr.rel (!%p19_p7) target bundleno = 6 (0x6), region = 89 }
 0x692   :  { %2842 = vsyncpa [#allocation3], 1 }
 0x693   :  { %2844 = vsyncpa [#allocation3 + $0x1], 1 }
 0x694   :  { %2845 = vsyncpa [#allocation6], 1 }
 0x695   :  { %2846 = vsyncpa [#allocation4], 1 }
 0x696   :  { %2848 = vsyncpa [#allocation4 + $0x1], 1 }

</bundles_post_ra>
